<compile_context>
chip_gen: v5e
topology: v5e:2x2
jax: 0.10.0
libtpu: 0.0.40
codegen_flags: <defaults>
</compile_context>

<pallas_src>
import functools

import jax
import jax.numpy as jnp
from jax.experimental import pallas as pl
from jax.experimental.pallas import tpu as pltpu

EPS = 1e-5  # torch.nn.InstanceNorm2d default eps


def _shifted_taps(a, W, masks):
    """All nine reflection-padded 3x3 taps of `a`, in flat lane-dense layout.

    a: (C, H*W) with flat index p = h*W + w on the lane axis.
    Returns a list indexed by k = kh*3 + kw (the conv-weight flattening order);
    taps[k][c, h*W + w] == a[c, refl(h + kh - 1)*W + refl(w + kw - 1)],
    i.e. exactly what ReflectionPad2d(1) + a 3x3 window would read.
    Shifts use pltpu.roll (XLU) with boundary fix-ups from precomputed masks,
    so there is no in-kernel concatenation or 2-D re-layout.
    """
    is_left, is_right, is_top, is_bot = masks
    HW = a.shape[-1]

    left = pltpu.roll(a, 1, 1)        # a[h, w-1] in the interior
    right = pltpu.roll(a, HW - 1, 1)  # a[h, w+1] in the interior
    sw = (
        jnp.where(is_left, right, left),   # dw = -1 (reflect at w == 0)
        a,                                  # dw =  0
        jnp.where(is_right, left, right),   # dw = +1 (reflect at w == W-1)
    )

    taps = [None] * 9
    for kw in range(3):
        b = sw[kw]
        up = pltpu.roll(b, W, 1)          # b[h-1, w] in the interior
        down = pltpu.roll(b, HW - W, 1)   # b[h+1, w] in the interior
        taps[0 * 3 + kw] = jnp.where(is_top, down, up)   # dh = -1 (reflect top)
        taps[1 * 3 + kw] = b                              # dh =  0
        taps[2 * 3 + kw] = jnp.where(is_bot, up, down)    # dh = +1 (reflect bottom)
    return taps


def _conv3x3_instnorm(a, w_taps, W, masks, relu):
    """Reflect-padded 3x3 conv (9 MXU matmuls) + InstanceNorm (+ optional ReLU).

    a:      (C_in, H*W) lane-dense activations, f32.
    w_taps: (9, C_out, C_in); w_taps[kh*3 + kw] == torch_weight[:, :, kh, kw].
    The conv bias is intentionally omitted: a per-channel constant is cancelled
    exactly by the mean subtraction of the affine-free InstanceNorm.
    """
    C_out = w_taps.shape[1]
    HW = a.shape[-1]
    taps = _shifted_taps(a, W, masks)

    y = jnp.zeros((C_out, HW), jnp.float32)
    for k in range(9):
        y = y + jnp.dot(
            w_taps[k], taps[k],
            preferred_element_type=jnp.float32,
            precision=jax.lax.Precision.HIGHEST,
        )

    # InstanceNorm2d: per-channel mean/var over H*W, biased var, no affine.
    mu = jnp.mean(y, axis=-1, keepdims=True)
    centered = y - mu  # reused for both the variance and the normalization
    var = jnp.mean(centered * centered, axis=-1, keepdims=True)
    out = centered * jax.lax.rsqrt(var + EPS)
    if relu:
        out = jnp.maximum(out, 0.0)
    return out


def residual_block_kernel(x_ref, w1_ref, w2_ref, o_ref, *, H, W):
    # x_ref, o_ref: (bn, C, H*W) VMEM blocks, lane-dense (H*W on the lane axis).
    # w*_ref:       (9, C, C) VMEM weight taps, resident across the whole grid.
    bn, C, HW = x_ref.shape

    # Position masks (shared by both convs): p = h*W + w on the lane axis.
    lane = jax.lax.broadcasted_iota(jnp.int32, (C, HW), 1)
    col = lane % W
    masks = (col == 0, col == W - 1, lane < W, lane >= HW - W)

    w1 = w1_ref[...]
    w2 = w2_ref[...]

    for b in range(bn):  # static unroll over the per-step batch block
        x = x_ref[b]
        h = _conv3x3_instnorm(x, w1, W, masks, relu=True)
        h = _conv3x3_instnorm(h, w2, W, masks, relu=False)
        o_ref[b] = x + h


def _pick_batch_block(n, per_sample_bytes, target_bytes=128 * 1024):
    """Batch block size: big enough to amortize the ~0.35us/step pipeline
    overhead, but keep >= 2 grid steps so the 'parallel' axis can split across
    v7x's two TensorCores, and always divide N exactly."""
    bn = max(1, min(n, target_bytes // max(per_sample_bytes, 1)))
    if n >= 2:
        bn = max(1, min(bn, n // 2))
    while n % bn:
        bn -= 1
    return bn


def residual_block(x, w1, b1, w2, b2):
    """x: (N, C, H, W) f32; w*: (C, C, 3, 3) f32; b*: (C,) f32 -> (N, C, H, W)."""
    N, C, H, W = x.shape
    assert H >= 2 and W >= 2, "ReflectionPad2d(1) requires H, W >= 2"
    HW = H * W

    # Bias before an affine-free InstanceNorm is a mathematical no-op.
    del b1, b2

    # (C_out, C_in, 3, 3) -> (9, C_out, C_in), tap index k = kh*3 + kw.
    w1t = jnp.transpose(w1, (2, 3, 0, 1)).reshape(9, C, C)
    w2t = jnp.transpose(w2, (2, 3, 0, 1)).reshape(9, C, C)

    # Lane-dense activation layout; contiguous reshape (free at the XLA level).
    xf = x.reshape(N, C, HW)

    bn = _pick_batch_block(N, C * HW * x.dtype.itemsize)
    kernel = functools.partial(residual_block_kernel, H=H, W=W)

    out = pl.pallas_call(
        kernel,
        out_shape=jax.ShapeDtypeStruct((N, C, HW), x.dtype),
        grid=(N // bn,),
        in_specs=[
            pl.BlockSpec((bn, C, HW), lambda n: (n, 0, 0)),
            pl.BlockSpec((9, C, C), lambda n: (0, 0, 0)),
            pl.BlockSpec((9, C, C), lambda n: (0, 0, 0)),
        ],
        out_specs=pl.BlockSpec((bn, C, HW), lambda n: (n, 0, 0)),
        compiler_params=pltpu.CompilerParams(
            dimension_semantics=("parallel",),
            vmem_limit_bytes=32 * 1024 * 1024,
        ),
    )(xf, w1t, w2t)
    return out.reshape(N, C, H, W)


def ref_forward(x, w1, b1, w2, b2):
    # Pure-JAX reference of the PyTorch module (for the correctness check).
    def conv(t, w, b):
        tp = jnp.pad(t, ((0, 0), (0, 0), (1, 1), (1, 1)), mode="reflect")
        y = jax.lax.conv_general_dilated(
            tp, w, (1, 1), "VALID",
            dimension_numbers=("NCHW", "OIHW", "NCHW"),
            precision=jax.lax.Precision.HIGHEST)
        return y + b[None, :, None, None]

    def inorm(t):
        mu = t.mean(axis=(2, 3), keepdims=True)
        var = ((t - mu) ** 2).mean(axis=(2, 3), keepdims=True)
        return (t - mu) * jax.lax.rsqrt(var + EPS)

    h = jnp.maximum(inorm(conv(x, w1, b1)), 0.0)
    h = inorm(conv(h, w2, b2))
    return x + h


if __name__ == "__main__":
    N, C, H, W = 2, 4, 16, 16
    key = jax.random.PRNGKey(0)
    kx, k1, k2, k3, k4 = jax.random.split(key, 5)

    x = jax.random.normal(kx, (N, C, H, W), jnp.float32)

    # Deterministic param init (PyTorch-style uniform bounds, synthetic values).
    fan_in = float(C * 3 * 3)
    bound = 1.0 / (fan_in ** 0.5)
    w1 = jax.random.uniform(k1, (C, C, 3, 3), jnp.float32, -bound, bound)
    b1 = jax.random.uniform(k2, (C,), jnp.float32, -bound, bound)
    w2 = jax.random.uniform(k3, (C, C, 3, 3), jnp.float32, -bound, bound)
    b2 = jax.random.uniform(k4, (C,), jnp.float32, -bound, bound)

    out = residual_block(x, w1, b1, w2, b2)
    out = jax.block_until_ready(out)

    ref = ref_forward(x, w1, b1, w2, b2)
    max_err = float(jnp.max(jnp.abs(out - ref)))
    assert out.shape == (N, C, H, W)
    assert jnp.allclose(out, ref, atol=1e-4, rtol=1e-4), max_err

    print("KERNEL_OK")
</pallas_src>

<mosaic_0001>
module attributes {stable_mosaic.version = 11 : i64} {
  func.func @residual_block_kernel(%arg0: i32, %arg1: memref<1x4x256xf32, #tpu.memory_space<vmem>>, %arg2: memref<9x4x4xf32, #tpu.memory_space<vmem>>, %arg3: memref<9x4x4xf32, #tpu.memory_space<vmem>>, %arg4: memref<1x4x256xf32, #tpu.memory_space<vmem>>) attributes {dimension_semantics = [#tpu.dimension_semantics<parallel>], iteration_bounds = array<i64: 2>, scalar_prefetch = 0 : i64, scratch_operands = 0 : i64, tpu.core_type = #tpu.core_type<tc>, window_params = [{transform_indices = @transform_0, window_bounds = array<i64: 1, 4, 256>}, {pipeline_mode = #tpu.pipeline_mode<synchronous>, transform_indices = @transform_1, window_bounds = array<i64: 9, 4, 4>}, {pipeline_mode = #tpu.pipeline_mode<synchronous>, transform_indices = @transform_2, window_bounds = array<i64: 9, 4, 4>}, {transform_indices = @transform_3, window_bounds = array<i64: 1, 4, 256>}]} {
    %0 = tpu.iota {dimensions = array<i32: 1>} : vector<4x256xi32>
    %c16_i32 = arith.constant 16 : i32
    %c0_i32 = arith.constant 0 : i32
    %1 = arith.cmpi eq, %c16_i32, %c0_i32 : i32
    %c1_i32 = arith.constant 1 : i32
    %2 = arith.select %1, %c1_i32, %c16_i32 : i32
    %3 = vector.broadcast %2 : i32 to vector<4x256xi32>
    %4 = arith.remsi %0, %3 : vector<4x256xi32>
    %c0_i32_0 = arith.constant 0 : i32
    %5 = vector.broadcast %c0_i32_0 : i32 to vector<4x256xi32>
    %6 = arith.cmpi ne, %4, %5 : vector<4x256xi32>
    %c0_i32_1 = arith.constant 0 : i32
    %7 = vector.broadcast %c0_i32_1 : i32 to vector<4x256xi32>
    %8 = arith.cmpi slt, %4, %7 : vector<4x256xi32>
    %c0_i32_2 = arith.constant 0 : i32
    %9 = arith.cmpi slt, %2, %c0_i32_2 : i32
    %10 = vector.broadcast %9 : i1 to vector<4x256xi1>
    %11 = vector.broadcast %10 : vector<4x256xi1> to vector<4x256xi1>
    %12 = arith.xori %8, %11 : vector<4x256xi1>
    %13 = arith.andi %12, %6 : vector<4x256xi1>
    %14 = vector.broadcast %2 : i32 to vector<4x256xi32>
    %15 = arith.addi %4, %14 : vector<4x256xi32>
    %16 = arith.select %13, %15, %4 : vector<4x256xi1>, vector<4x256xi32>
    %c0_i32_3 = arith.constant 0 : i32
    %17 = vector.broadcast %c0_i32_3 : i32 to vector<4x256xi32>
    %18 = arith.cmpi eq, %16, %17 : vector<4x256xi32>
    %c15_i32 = arith.constant 15 : i32
    %19 = vector.broadcast %c15_i32 : i32 to vector<4x256xi32>
    %20 = arith.cmpi eq, %16, %19 : vector<4x256xi32>
    %c16_i32_4 = arith.constant 16 : i32
    %21 = vector.broadcast %c16_i32_4 : i32 to vector<4x256xi32>
    %22 = arith.cmpi slt, %0, %21 : vector<4x256xi32>
    %c240_i32 = arith.constant 240 : i32
    %23 = vector.broadcast %c240_i32 : i32 to vector<4x256xi32>
    %24 = arith.cmpi sge, %0, %23 : vector<4x256xi32>
    %c0 = arith.constant 0 : index
    %c0_5 = arith.constant 0 : index
    %c0_6 = arith.constant 0 : index
    %25 = vector.load %arg2[%c0, %c0_5, %c0_6] : memref<9x4x4xf32, #tpu.memory_space<vmem>>, vector<9x4x4xf32>
    %c0_7 = arith.constant 0 : index
    %c0_8 = arith.constant 0 : index
    %c0_9 = arith.constant 0 : index
    %26 = vector.load %arg3[%c0_7, %c0_8, %c0_9] : memref<9x4x4xf32, #tpu.memory_space<vmem>>, vector<9x4x4xf32>
    %c0_10 = arith.constant 0 : index
    %c0_11 = arith.constant 0 : index
    %c0_12 = arith.constant 0 : index
    %27 = vector.load %arg1[%c0_10, %c0_11, %c0_12] : memref<1x4x256xf32, #tpu.memory_space<vmem>>, vector<1x4x256xf32>
    %28 = vector.shape_cast %27 : vector<1x4x256xf32> to vector<4x256xf32>
    %c1_i32_13 = arith.constant 1 : i32
    %29 = tpu.dynamic_rotate %28 by %c1_i32_13 dim 1 : vector<4x256xf32>, i32 -> vector<4x256xf32>
    %c255_i32 = arith.constant 255 : i32
    %30 = tpu.dynamic_rotate %28 by %c255_i32 dim 1 : vector<4x256xf32>, i32 -> vector<4x256xf32>
    %31 = arith.select %18, %30, %29 : vector<4x256xi1>, vector<4x256xf32>
    %32 = arith.select %20, %29, %30 : vector<4x256xi1>, vector<4x256xf32>
    %c16_i32_14 = arith.constant 16 : i32
    %33 = tpu.dynamic_rotate %31 by %c16_i32_14 dim 1 : vector<4x256xf32>, i32 -> vector<4x256xf32>
    %c240_i32_15 = arith.constant 240 : i32
    %34 = tpu.dynamic_rotate %31 by %c240_i32_15 dim 1 : vector<4x256xf32>, i32 -> vector<4x256xf32>
    %35 = arith.select %22, %34, %33 : vector<4x256xi1>, vector<4x256xf32>
    %36 = arith.select %24, %33, %34 : vector<4x256xi1>, vector<4x256xf32>
    %c16_i32_16 = arith.constant 16 : i32
    %37 = tpu.dynamic_rotate %28 by %c16_i32_16 dim 1 : vector<4x256xf32>, i32 -> vector<4x256xf32>
    %c240_i32_17 = arith.constant 240 : i32
    %38 = tpu.dynamic_rotate %28 by %c240_i32_17 dim 1 : vector<4x256xf32>, i32 -> vector<4x256xf32>
    %39 = arith.select %22, %38, %37 : vector<4x256xi1>, vector<4x256xf32>
    %40 = arith.select %24, %37, %38 : vector<4x256xi1>, vector<4x256xf32>
    %c16_i32_18 = arith.constant 16 : i32
    %41 = tpu.dynamic_rotate %32 by %c16_i32_18 dim 1 : vector<4x256xf32>, i32 -> vector<4x256xf32>
    %c240_i32_19 = arith.constant 240 : i32
    %42 = tpu.dynamic_rotate %32 by %c240_i32_19 dim 1 : vector<4x256xf32>, i32 -> vector<4x256xf32>
    %43 = arith.select %22, %42, %41 : vector<4x256xi1>, vector<4x256xf32>
    %44 = arith.select %24, %41, %42 : vector<4x256xi1>, vector<4x256xf32>
    %cst = arith.constant 0.000000e+00 : f32
    %45 = vector.broadcast %cst : f32 to vector<4x256xf32>
    %46 = vector.extract_strided_slice %25 {offsets = [0, 0, 0], sizes = [1, 4, 4], strides = [1, 1, 1]} : vector<9x4x4xf32> to vector<1x4x4xf32>
    %47 = vector.shape_cast %46 : vector<1x4x4xf32> to vector<4x4xf32>
    %cst_20 = arith.constant dense<0.000000e+00> : vector<4x256xf32>
    %48 = tpu.matmul %47, %35, %cst_20 {dimension_numbers = #tpu.dot_dimension_numbers<[1], [0], [0], [1], [0, 0, 1, 1], [], []>, precision = #tpu.contract_precision<fp32>} : vector<4x4xf32>, vector<4x256xf32>, vector<4x256xf32> -> vector<4x256xf32>
    %49 = arith.addf %45, %48 : vector<4x256xf32>
    %50 = vector.extract_strided_slice %25 {offsets = [1, 0, 0], sizes = [1, 4, 4], strides = [1, 1, 1]} : vector<9x4x4xf32> to vector<1x4x4xf32>
    %51 = vector.shape_cast %50 : vector<1x4x4xf32> to vector<4x4xf32>
    %cst_21 = arith.constant dense<0.000000e+00> : vector<4x256xf32>
    %52 = tpu.matmul %51, %39, %cst_21 {dimension_numbers = #tpu.dot_dimension_numbers<[1], [0], [0], [1], [0, 0, 1, 1], [], []>, precision = #tpu.contract_precision<fp32>} : vector<4x4xf32>, vector<4x256xf32>, vector<4x256xf32> -> vector<4x256xf32>
    %53 = arith.addf %49, %52 : vector<4x256xf32>
    %54 = vector.extract_strided_slice %25 {offsets = [2, 0, 0], sizes = [1, 4, 4], strides = [1, 1, 1]} : vector<9x4x4xf32> to vector<1x4x4xf32>
    %55 = vector.shape_cast %54 : vector<1x4x4xf32> to vector<4x4xf32>
    %cst_22 = arith.constant dense<0.000000e+00> : vector<4x256xf32>
    %56 = tpu.matmul %55, %43, %cst_22 {dimension_numbers = #tpu.dot_dimension_numbers<[1], [0], [0], [1], [0, 0, 1, 1], [], []>, precision = #tpu.contract_precision<fp32>} : vector<4x4xf32>, vector<4x256xf32>, vector<4x256xf32> -> vector<4x256xf32>
    %57 = arith.addf %53, %56 : vector<4x256xf32>
    %58 = vector.extract_strided_slice %25 {offsets = [3, 0, 0], sizes = [1, 4, 4], strides = [1, 1, 1]} : vector<9x4x4xf32> to vector<1x4x4xf32>
    %59 = vector.shape_cast %58 : vector<1x4x4xf32> to vector<4x4xf32>
    %cst_23 = arith.constant dense<0.000000e+00> : vector<4x256xf32>
    %60 = tpu.matmul %59, %31, %cst_23 {dimension_numbers = #tpu.dot_dimension_numbers<[1], [0], [0], [1], [0, 0, 1, 1], [], []>, precision = #tpu.contract_precision<fp32>} : vector<4x4xf32>, vector<4x256xf32>, vector<4x256xf32> -> vector<4x256xf32>
    %61 = arith.addf %57, %60 : vector<4x256xf32>
    %62 = vector.extract_strided_slice %25 {offsets = [4, 0, 0], sizes = [1, 4, 4], strides = [1, 1, 1]} : vector<9x4x4xf32> to vector<1x4x4xf32>
    %63 = vector.shape_cast %62 : vector<1x4x4xf32> to vector<4x4xf32>
    %cst_24 = arith.constant dense<0.000000e+00> : vector<4x256xf32>
    %64 = tpu.matmul %63, %28, %cst_24 {dimension_numbers = #tpu.dot_dimension_numbers<[1], [0], [0], [1], [0, 0, 1, 1], [], []>, precision = #tpu.contract_precision<fp32>} : vector<4x4xf32>, vector<4x256xf32>, vector<4x256xf32> -> vector<4x256xf32>
    %65 = arith.addf %61, %64 : vector<4x256xf32>
    %66 = vector.extract_strided_slice %25 {offsets = [5, 0, 0], sizes = [1, 4, 4], strides = [1, 1, 1]} : vector<9x4x4xf32> to vector<1x4x4xf32>
    %67 = vector.shape_cast %66 : vector<1x4x4xf32> to vector<4x4xf32>
    %cst_25 = arith.constant dense<0.000000e+00> : vector<4x256xf32>
    %68 = tpu.matmul %67, %32, %cst_25 {dimension_numbers = #tpu.dot_dimension_numbers<[1], [0], [0], [1], [0, 0, 1, 1], [], []>, precision = #tpu.contract_precision<fp32>} : vector<4x4xf32>, vector<4x256xf32>, vector<4x256xf32> -> vector<4x256xf32>
    %69 = arith.addf %65, %68 : vector<4x256xf32>
    %70 = vector.extract_strided_slice %25 {offsets = [6, 0, 0], sizes = [1, 4, 4], strides = [1, 1, 1]} : vector<9x4x4xf32> to vector<1x4x4xf32>
    %71 = vector.shape_cast %70 : vector<1x4x4xf32> to vector<4x4xf32>
    %cst_26 = arith.constant dense<0.000000e+00> : vector<4x256xf32>
    %72 = tpu.matmul %71, %36, %cst_26 {dimension_numbers = #tpu.dot_dimension_numbers<[1], [0], [0], [1], [0, 0, 1, 1], [], []>, precision = #tpu.contract_precision<fp32>} : vector<4x4xf32>, vector<4x256xf32>, vector<4x256xf32> -> vector<4x256xf32>
    %73 = arith.addf %69, %72 : vector<4x256xf32>
    %74 = vector.extract_strided_slice %25 {offsets = [7, 0, 0], sizes = [1, 4, 4], strides = [1, 1, 1]} : vector<9x4x4xf32> to vector<1x4x4xf32>
    %75 = vector.shape_cast %74 : vector<1x4x4xf32> to vector<4x4xf32>
    %cst_27 = arith.constant dense<0.000000e+00> : vector<4x256xf32>
    %76 = tpu.matmul %75, %40, %cst_27 {dimension_numbers = #tpu.dot_dimension_numbers<[1], [0], [0], [1], [0, 0, 1, 1], [], []>, precision = #tpu.contract_precision<fp32>} : vector<4x4xf32>, vector<4x256xf32>, vector<4x256xf32> -> vector<4x256xf32>
    %77 = arith.addf %73, %76 : vector<4x256xf32>
    %78 = vector.extract_strided_slice %25 {offsets = [8, 0, 0], sizes = [1, 4, 4], strides = [1, 1, 1]} : vector<9x4x4xf32> to vector<1x4x4xf32>
    %79 = vector.shape_cast %78 : vector<1x4x4xf32> to vector<4x4xf32>
    %cst_28 = arith.constant dense<0.000000e+00> : vector<4x256xf32>
    %80 = tpu.matmul %79, %44, %cst_28 {dimension_numbers = #tpu.dot_dimension_numbers<[1], [0], [0], [1], [0, 0, 1, 1], [], []>, precision = #tpu.contract_precision<fp32>} : vector<4x4xf32>, vector<4x256xf32>, vector<4x256xf32> -> vector<4x256xf32>
    %81 = arith.addf %77, %80 : vector<4x256xf32>
    %cst_29 = arith.constant dense<0.000000e+00> : vector<4xf32>
    %82 = vector.multi_reduction <add>, %81, %cst_29 [1] : vector<4x256xf32> to vector<4xf32>
    %83 = vector.shape_cast %82 : vector<4xf32> to vector<4x1xf32>
    %cst_30 = arith.constant 2.560000e+02 : f32
    %84 = vector.broadcast %cst_30 : f32 to vector<4x1xf32>
    %85 = arith.divf %83, %84 : vector<4x1xf32>
    %86 = vector.broadcast %85 : vector<4x1xf32> to vector<4x256xf32>
    %87 = arith.subf %81, %86 : vector<4x256xf32>
    %88 = arith.mulf %87, %87 : vector<4x256xf32>
    %cst_31 = arith.constant dense<0.000000e+00> : vector<4xf32>
    %89 = vector.multi_reduction <add>, %88, %cst_31 [1] : vector<4x256xf32> to vector<4xf32>
    %90 = vector.shape_cast %89 : vector<4xf32> to vector<4x1xf32>
    %cst_32 = arith.constant 2.560000e+02 : f32
    %91 = vector.broadcast %cst_32 : f32 to vector<4x1xf32>
    %92 = arith.divf %90, %91 : vector<4x1xf32>
    %cst_33 = arith.constant 9.99999974E-6 : f32
    %93 = vector.broadcast %cst_33 : f32 to vector<4x1xf32>
    %94 = arith.addf %92, %93 : vector<4x1xf32>
    %95 = math.rsqrt %94 : vector<4x1xf32>
    %96 = vector.broadcast %95 : vector<4x1xf32> to vector<4x256xf32>
    %97 = arith.mulf %87, %96 : vector<4x256xf32>
    %cst_34 = arith.constant 0.000000e+00 : f32
    %98 = vector.broadcast %cst_34 : f32 to vector<4x256xf32>
    %99 = arith.maximumf %97, %98 : vector<4x256xf32>
    %c1_i32_35 = arith.constant 1 : i32
    %100 = tpu.dynamic_rotate %99 by %c1_i32_35 dim 1 : vector<4x256xf32>, i32 -> vector<4x256xf32>
    %c255_i32_36 = arith.constant 255 : i32
    %101 = tpu.dynamic_rotate %99 by %c255_i32_36 dim 1 : vector<4x256xf32>, i32 -> vector<4x256xf32>
    %102 = arith.select %18, %101, %100 : vector<4x256xi1>, vector<4x256xf32>
    %103 = arith.select %20, %100, %101 : vector<4x256xi1>, vector<4x256xf32>
    %c16_i32_37 = arith.constant 16 : i32
    %104 = tpu.dynamic_rotate %102 by %c16_i32_37 dim 1 : vector<4x256xf32>, i32 -> vector<4x256xf32>
    %c240_i32_38 = arith.constant 240 : i32
    %105 = tpu.dynamic_rotate %102 by %c240_i32_38 dim 1 : vector<4x256xf32>, i32 -> vector<4x256xf32>
    %106 = arith.select %22, %105, %104 : vector<4x256xi1>, vector<4x256xf32>
    %107 = arith.select %24, %104, %105 : vector<4x256xi1>, vector<4x256xf32>
    %c16_i32_39 = arith.constant 16 : i32
    %108 = tpu.dynamic_rotate %99 by %c16_i32_39 dim 1 : vector<4x256xf32>, i32 -> vector<4x256xf32>
    %c240_i32_40 = arith.constant 240 : i32
    %109 = tpu.dynamic_rotate %99 by %c240_i32_40 dim 1 : vector<4x256xf32>, i32 -> vector<4x256xf32>
    %110 = arith.select %22, %109, %108 : vector<4x256xi1>, vector<4x256xf32>
    %111 = arith.select %24, %108, %109 : vector<4x256xi1>, vector<4x256xf32>
    %c16_i32_41 = arith.constant 16 : i32
    %112 = tpu.dynamic_rotate %103 by %c16_i32_41 dim 1 : vector<4x256xf32>, i32 -> vector<4x256xf32>
    %c240_i32_42 = arith.constant 240 : i32
    %113 = tpu.dynamic_rotate %103 by %c240_i32_42 dim 1 : vector<4x256xf32>, i32 -> vector<4x256xf32>
    %114 = arith.select %22, %113, %112 : vector<4x256xi1>, vector<4x256xf32>
    %115 = arith.select %24, %112, %113 : vector<4x256xi1>, vector<4x256xf32>
    %cst_43 = arith.constant 0.000000e+00 : f32
    %116 = vector.broadcast %cst_43 : f32 to vector<4x256xf32>
    %117 = vector.extract_strided_slice %26 {offsets = [0, 0, 0], sizes = [1, 4, 4], strides = [1, 1, 1]} : vector<9x4x4xf32> to vector<1x4x4xf32>
    %118 = vector.shape_cast %117 : vector<1x4x4xf32> to vector<4x4xf32>
    %cst_44 = arith.constant dense<0.000000e+00> : vector<4x256xf32>
    %119 = tpu.matmul %118, %106, %cst_44 {dimension_numbers = #tpu.dot_dimension_numbers<[1], [0], [0], [1], [0, 0, 1, 1], [], []>, precision = #tpu.contract_precision<fp32>} : vector<4x4xf32>, vector<4x256xf32>, vector<4x256xf32> -> vector<4x256xf32>
    %120 = arith.addf %116, %119 : vector<4x256xf32>
    %121 = vector.extract_strided_slice %26 {offsets = [1, 0, 0], sizes = [1, 4, 4], strides = [1, 1, 1]} : vector<9x4x4xf32> to vector<1x4x4xf32>
    %122 = vector.shape_cast %121 : vector<1x4x4xf32> to vector<4x4xf32>
    %cst_45 = arith.constant dense<0.000000e+00> : vector<4x256xf32>
    %123 = tpu.matmul %122, %110, %cst_45 {dimension_numbers = #tpu.dot_dimension_numbers<[1], [0], [0], [1], [0, 0, 1, 1], [], []>, precision = #tpu.contract_precision<fp32>} : vector<4x4xf32>, vector<4x256xf32>, vector<4x256xf32> -> vector<4x256xf32>
    %124 = arith.addf %120, %123 : vector<4x256xf32>
    %125 = vector.extract_strided_slice %26 {offsets = [2, 0, 0], sizes = [1, 4, 4], strides = [1, 1, 1]} : vector<9x4x4xf32> to vector<1x4x4xf32>
    %126 = vector.shape_cast %125 : vector<1x4x4xf32> to vector<4x4xf32>
    %cst_46 = arith.constant dense<0.000000e+00> : vector<4x256xf32>
    %127 = tpu.matmul %126, %114, %cst_46 {dimension_numbers = #tpu.dot_dimension_numbers<[1], [0], [0], [1], [0, 0, 1, 1], [], []>, precision = #tpu.contract_precision<fp32>} : vector<4x4xf32>, vector<4x256xf32>, vector<4x256xf32> -> vector<4x256xf32>
    %128 = arith.addf %124, %127 : vector<4x256xf32>
    %129 = vector.extract_strided_slice %26 {offsets = [3, 0, 0], sizes = [1, 4, 4], strides = [1, 1, 1]} : vector<9x4x4xf32> to vector<1x4x4xf32>
    %130 = vector.shape_cast %129 : vector<1x4x4xf32> to vector<4x4xf32>
    %cst_47 = arith.constant dense<0.000000e+00> : vector<4x256xf32>
    %131 = tpu.matmul %130, %102, %cst_47 {dimension_numbers = #tpu.dot_dimension_numbers<[1], [0], [0], [1], [0, 0, 1, 1], [], []>, precision = #tpu.contract_precision<fp32>} : vector<4x4xf32>, vector<4x256xf32>, vector<4x256xf32> -> vector<4x256xf32>
    %132 = arith.addf %128, %131 : vector<4x256xf32>
    %133 = vector.extract_strided_slice %26 {offsets = [4, 0, 0], sizes = [1, 4, 4], strides = [1, 1, 1]} : vector<9x4x4xf32> to vector<1x4x4xf32>
    %134 = vector.shape_cast %133 : vector<1x4x4xf32> to vector<4x4xf32>
    %cst_48 = arith.constant dense<0.000000e+00> : vector<4x256xf32>
    %135 = tpu.matmul %134, %99, %cst_48 {dimension_numbers = #tpu.dot_dimension_numbers<[1], [0], [0], [1], [0, 0, 1, 1], [], []>, precision = #tpu.contract_precision<fp32>} : vector<4x4xf32>, vector<4x256xf32>, vector<4x256xf32> -> vector<4x256xf32>
    %136 = arith.addf %132, %135 : vector<4x256xf32>
    %137 = vector.extract_strided_slice %26 {offsets = [5, 0, 0], sizes = [1, 4, 4], strides = [1, 1, 1]} : vector<9x4x4xf32> to vector<1x4x4xf32>
    %138 = vector.shape_cast %137 : vector<1x4x4xf32> to vector<4x4xf32>
    %cst_49 = arith.constant dense<0.000000e+00> : vector<4x256xf32>
    %139 = tpu.matmul %138, %103, %cst_49 {dimension_numbers = #tpu.dot_dimension_numbers<[1], [0], [0], [1], [0, 0, 1, 1], [], []>, precision = #tpu.contract_precision<fp32>} : vector<4x4xf32>, vector<4x256xf32>, vector<4x256xf32> -> vector<4x256xf32>
    %140 = arith.addf %136, %139 : vector<4x256xf32>
    %141 = vector.extract_strided_slice %26 {offsets = [6, 0, 0], sizes = [1, 4, 4], strides = [1, 1, 1]} : vector<9x4x4xf32> to vector<1x4x4xf32>
    %142 = vector.shape_cast %141 : vector<1x4x4xf32> to vector<4x4xf32>
    %cst_50 = arith.constant dense<0.000000e+00> : vector<4x256xf32>
    %143 = tpu.matmul %142, %107, %cst_50 {dimension_numbers = #tpu.dot_dimension_numbers<[1], [0], [0], [1], [0, 0, 1, 1], [], []>, precision = #tpu.contract_precision<fp32>} : vector<4x4xf32>, vector<4x256xf32>, vector<4x256xf32> -> vector<4x256xf32>
    %144 = arith.addf %140, %143 : vector<4x256xf32>
    %145 = vector.extract_strided_slice %26 {offsets = [7, 0, 0], sizes = [1, 4, 4], strides = [1, 1, 1]} : vector<9x4x4xf32> to vector<1x4x4xf32>
    %146 = vector.shape_cast %145 : vector<1x4x4xf32> to vector<4x4xf32>
    %cst_51 = arith.constant dense<0.000000e+00> : vector<4x256xf32>
    %147 = tpu.matmul %146, %111, %cst_51 {dimension_numbers = #tpu.dot_dimension_numbers<[1], [0], [0], [1], [0, 0, 1, 1], [], []>, precision = #tpu.contract_precision<fp32>} : vector<4x4xf32>, vector<4x256xf32>, vector<4x256xf32> -> vector<4x256xf32>
    %148 = arith.addf %144, %147 : vector<4x256xf32>
    %149 = vector.extract_strided_slice %26 {offsets = [8, 0, 0], sizes = [1, 4, 4], strides = [1, 1, 1]} : vector<9x4x4xf32> to vector<1x4x4xf32>
    %150 = vector.shape_cast %149 : vector<1x4x4xf32> to vector<4x4xf32>
    %cst_52 = arith.constant dense<0.000000e+00> : vector<4x256xf32>
    %151 = tpu.matmul %150, %115, %cst_52 {dimension_numbers = #tpu.dot_dimension_numbers<[1], [0], [0], [1], [0, 0, 1, 1], [], []>, precision = #tpu.contract_precision<fp32>} : vector<4x4xf32>, vector<4x256xf32>, vector<4x256xf32> -> vector<4x256xf32>
    %152 = arith.addf %148, %151 : vector<4x256xf32>
    %cst_53 = arith.constant dense<0.000000e+00> : vector<4xf32>
    %153 = vector.multi_reduction <add>, %152, %cst_53 [1] : vector<4x256xf32> to vector<4xf32>
    %154 = vector.shape_cast %153 : vector<4xf32> to vector<4x1xf32>
    %cst_54 = arith.constant 2.560000e+02 : f32
    %155 = vector.broadcast %cst_54 : f32 to vector<4x1xf32>
    %156 = arith.divf %154, %155 : vector<4x1xf32>
    %157 = vector.broadcast %156 : vector<4x1xf32> to vector<4x256xf32>
    %158 = arith.subf %152, %157 : vector<4x256xf32>
    %159 = arith.mulf %158, %158 : vector<4x256xf32>
    %cst_55 = arith.constant dense<0.000000e+00> : vector<4xf32>
    %160 = vector.multi_reduction <add>, %159, %cst_55 [1] : vector<4x256xf32> to vector<4xf32>
    %161 = vector.shape_cast %160 : vector<4xf32> to vector<4x1xf32>
    %cst_56 = arith.constant 2.560000e+02 : f32
    %162 = vector.broadcast %cst_56 : f32 to vector<4x1xf32>
    %163 = arith.divf %161, %162 : vector<4x1xf32>
    %cst_57 = arith.constant 9.99999974E-6 : f32
    %164 = vector.broadcast %cst_57 : f32 to vector<4x1xf32>
    %165 = arith.addf %163, %164 : vector<4x1xf32>
    %166 = math.rsqrt %165 : vector<4x1xf32>
    %167 = vector.broadcast %166 : vector<4x1xf32> to vector<4x256xf32>
    %168 = arith.mulf %158, %167 : vector<4x256xf32>
    %169 = arith.addf %28, %168 : vector<4x256xf32>
    %c0_58 = arith.constant 0 : index
    %c0_59 = arith.constant 0 : index
    %c0_60 = arith.constant 0 : index
    %170 = vector.load %arg4[%c0_58, %c0_59, %c0_60] : memref<1x4x256xf32, #tpu.memory_space<vmem>>, vector<1x4x256xf32>
    %171 = vector.shape_cast %170 : vector<1x4x256xf32> to vector<4x256xf32>
    %172 = vector.shape_cast %169 : vector<4x256xf32> to vector<1x4x256xf32>
    tpu.vector_store %arg4[%c0_58, %c0_59, %c0_60], %172 {strides = array<i32>} : memref<1x4x256xf32, #tpu.memory_space<vmem>>, vector<1x4x256xf32>,
    return
  }
  func.func @transform_0(%arg0: i32) -> (i32, i32, i32) {
    %c0_i32 = arith.constant 0 : i32
    %c0_i32_0 = arith.constant 0 : i32
    %c0_i32_1 = arith.constant 0 : i32
    return %arg0, %c0_i32, %c0_i32_0 : i32, i32, i32
  }
  func.func @transform_1(%arg0: i32) -> (i32, i32, i32) {
    %c0_i32 = arith.constant 0 : i32
    %c0_i32_0 = arith.constant 0 : i32
    %c0_i32_1 = arith.constant 0 : i32
    %c0_i32_2 = arith.constant 0 : i32
    return %c0_i32, %c0_i32_0, %c0_i32_1 : i32, i32, i32
  }
  func.func @transform_2(%arg0: i32) -> (i32, i32, i32) {
    %c0_i32 = arith.constant 0 : i32
    %c0_i32_0 = arith.constant 0 : i32
    %c0_i32_1 = arith.constant 0 : i32
    %c0_i32_2 = arith.constant 0 : i32
    return %c0_i32, %c0_i32_0, %c0_i32_1 : i32, i32, i32
  }
  func.func @transform_3(%arg0: i32) -> (i32, i32, i32) {
    %c0_i32 = arith.constant 0 : i32
    %c0_i32_0 = arith.constant 0 : i32
    %c0_i32_1 = arith.constant 0 : i32
    return %arg0, %c0_i32, %c0_i32_0 : i32, i32, i32
  }
}

</mosaic_0001>

<bundles_post_ra>
// kernel: tpu_custom_call.1
= control target key start
LH: loop header
LB: loop body
LE: loop exit
PB: predicated region body
PF: predicated region fallthrough
CT: control target
= control target key end

     0   :  { %8 = vsyncpa [#allocation3], 0  ;;  %s7242_s0 = inlined_call_operand.vmem [shape: f32[2,4,256], index: 0, kind: input, shape index: {}]   ;;  %s7243_s1 = inlined_call_operand.vmem [shape: f32[9,4,4], index: 1, kind: input, shape index: {}]   ;;  %s7244_s2 = inlined_call_operand.vmem [shape: f32[9,4,4], index: 2, kind: input, shape index: {}]   ;;  %s7245_s3 = inlined_call_operand.hbm [shape: f32[2,4,256], index: 3, kind: output, shape index: {}]  }
   0x1   :  { %10 = vsyncpa [#allocation3 + $0x1], 0  ;;  %s6127_s12 = smov 0   ;;  %s6129_s13 = smov 0  }
   0x2   :  { %s6131_s14 = smov 0   ;;  %s6133_s15 = smov 0  }
   0x3 LB: > { %s6148_s16 = sadd.s32 4294967295, %s6100_s15   ;;  %s5974_s17 = sadd.s32 4294967294, %s6100_s15   ;;  %s6100_s15 = sphi %s6133_s15, %s7344_s15   ;;  %s6096_s14 = sphi %s6131_s14, %s7343_s14   ;;  %s6092_s13 = sphi %s6129_s13, %s7342_s13   ;;  %s6088_s12 = sphi %s6127_s12, %s7341_s12  }
   0x4   : > { %s6152_s18 = sadd.s32 1, %s6100_s15   ;;  %s91_s19 = sadd.s32 1, %s6096_s14 }
   0x5   : > { %s88_s20 = ssub.s32 %s6100_s15, %s6152_s18  ;;  %p101_p0 = scmp.ne.s32.totalorder %s6096_s14, %s6092_s13 }
   0x6   : > { %p89_p1 = scmp.eq.s32.totalorder %s88_s20, 0  ;;  %p102_p2 = scmp.eq.s32.totalorder %s6148_s16, 1 }
   0x7   : > { %p107_p3 = scmp.ne.s32.totalorder %s6092_s13, %s6088_s12  ;;  %p108_p4 = scmp.eq.s32.totalorder %s5974_s17, 1 }
   0x8   : > { %s6163_s21 = scalar_select %p89_p1, %s6096_s14, %s91_s19  }
   0x9   : > { %p6165_p5 = por %p102_p2, %p101_p0  ;;  %p6169_p6 = por %p108_p4, %p107_p3 }
   0xa   : > { %p5977_p7 = scmp.ge.s32.totalorder %s6100_s15, 1  ;;  %p140_p8 = scmp.lt.s32.totalorder %s6100_s15, 3 }
   0xc   : > { %p141_p9 = pnand %p5977_p7, %p140_p8 }
   0xe   : > { %144 = sbr.rel (%p141_p9) target bundleno = 1760 (0x6e0), region = 32 }
  0x13   : > { %p164_p10 = scmp.lt.s32.totalorder %s6148_s16, 1  ;;  %s6102_s29 = smov 1   ;;  %v169_v9 = vlaneseq  ;;  %v205_v14 = vld [vmem:[%s7243_s1 + $0x4] sm:$0xf]  ;;  %vm311_vm0 = vcmask 31744   ;;  %vm315_vm3 = vcmask 1043456  }
  0x14   : > { %s6103_s30 = smov 127   ;;  %s6104_s4 = smov 16   ;;  %v313_v16 = vsel %vm311_vm0, %v205_v14, 0  ;;  %v7260_v24 = vmov 0  ;;  %v7263_v25 = vmov 0  ;;  %v7266_v38 = vmov 0 }
  0x15   : > { %s165_s24 = scalar_select %p164_p10, %s6148_s16, 1  ;;  %v6195_v12 = vand.u32 127, %v169_v9  ;;  %v6206_v19 = vand.u32 4294901760, %v313_v16  ;;  %v7269_v42 = vmov 0  ;;  %v204_v57 = vld [vmem:[%s7243_s1] sm:$0xf] }
  0x16   : > { %s6105_s5 = smov 112   ;;  %v615_v58 = vsel %vm311_vm0, %v204_v57, 0  ;;  %s161_s10 = sand.u32 1, %s6092_s13  }
  0x17   : > { %s5986_s25 = sshll.u32 %s165_s24, 3  ;;  %7258 = vst [vmem:[#allocation6_spill] sm:$0xff] %v6195_v12  ;;  %v6198_v13 = vadd.s32 128, %v6195_v12  ;;  %v176_v17 = vand.u32 15, %v6195_v12  ;;  %vm200_vm1 = vcmp.lt.s32.totalorder %v6195_v12, 16  ;;  %vm233_vm2 = vcmp.lt.s32.totalorder %v6195_v12, 1 }
  0x18   : > { %s168_s28 = scalar_lea.vmem %s7242_s0, %s5986_s25  ;;  %vm245_vm4 = vcmp.lt.s32.totalorder %v6195_v12, 127  ;;  %v340_v27 = vsub.f32 %v313_v16, %v6206_v19  ;;  %vm262_vm7 = vcmp.lt.s32.totalorder %v6195_v12, 112  ;;  %v6301_v59 = vand.u32 4294901760, %v615_v58  ;;  %s5978_s11 = sshll.u32 %s161_s10, 3 }
  0x19   : > { %v6180_v0 = vld [vmem:[%s168_s28] sm:$0xff]  ;;  %7259 = vst [vmem:[#allocation7_spill] sm:$0xff] %v6198_v13  ;;  %v183_v18 = vand.u32 15, %v6198_v13  ;;  %vm6217_vm5 = vcmp.eq.s32.totalorder %v176_v17, 0  ;;  %vm6255_vm9 = vcmp.eq.s32.totalorder %v176_v17, 15  ;;  %vm203_vm10 = vcmp.ge.s32.totalorder %v6198_v13, 240 }
  0x1a   : > { %7257 = vst [vmem:[#allocation5_spill] sm:$0xff] %v6180_v0  ;;  %v7261_v24 = vsel %vm6217_vm5, 4294967295, %v7260_v24  ;;  %v341_v36 = vand.u32 4294901760, %v340_v27  ;;  %v7270_v42 = vsel %vm6255_vm9, 4294967295, %v7269_v42  ;;  %v6304_v61 = vsub.f32 %v615_v58, %v6301_v59  ;;  %s163_s17 = scalar_lea.vmem [#allocation2], %s5978_s11  ;;  %s6058_s28 = scalar_lea.hbm %s7245_s3, 16 }
  0x1b   : > { %224 = vst [vmem:[#allocation1] ss:$2 sm:$0xff] %v6180_v0  ;;  %vm6221_vm6 = vcmp.eq.s32.totalorder %v183_v18, 0  ;;  %vm6249_vm8 = vcmp.eq.s32.totalorder %v183_v18, 15  ;;  %v206_v18 = vld [vmem:[%s7243_s1 + $0x8] sm:$0xf] }
  0x1c   : > { %7262 = vst [vmem:[#allocation8_spill] sm:$0xff] %v7261_v24  ;;  %v7264_v25 = vsel %vm6221_vm6, 4294967295, %v7263_v25  ;;  %v7267_v38 = vsel %vm6249_vm8, 4294967295, %v7266_v38  ;;  %v342_v41 = vsub.f32 %v340_v27, %v341_v36  ;;  %v6307_v62 = vand.u32 4294901760, %v6304_v61  ;;  %s5912_s19 = sshll.u32 %s163_s17, 4  ;;  %s5913_s19 = int_to_ptr.vmem [resolvable:$true] %s5912_s19 }
  0x1d   : > { %7265 = vst [vmem:[#allocation9_spill] sm:$0xff] %v7264_v25 }
  0x1e   : > { %7268 = vst [vmem:[#allocation10_spill] sm:$0xff] %v7267_v38  ;;  %v343_v51 = vand.u32 4294901760, %v342_v41 }
  0x1f   : > { %7271 = vst [vmem:[#allocation11_spill] sm:$0xff] %v7270_v42 }
  0x22   : > { %v225_v1 = vld.sshfl [vmem:[#allocation1] sm:$0xff pattern:$0x75316420]  ;;  %v226_v2 = vld.sshfl [vmem:[#allocation1 + $0x8] sm:$0xff pattern:$0x75316420] }
  0x23   : > { %229 = vrot.lane.b32.xlu0 %v225_v1, %s6102_s29  ;;  %236 = vst [vmem:[#allocation1] ss:$2 sm:$0xff] %v6180_v0 }
  0x2a   : > { %v237_v3 = vld.sshfl [vmem:[#allocation1] sm:$0xff pattern:$0x75316420]  ;;  %v238_v4 = vld.sshfl [vmem:[#allocation1 + $0x8] sm:$0xff pattern:$0x75316420] }
  0x2b   : > { %231 = vrot.lane.b32.xlu0 %v226_v2, %s6102_s29  ;;  %241 = vrot.lane.b32.xlu1 %v237_v3, %s6103_s30  ;;  %269 = vst [vmem:[#allocation1] ss:$2 sm:$0xff] %v6180_v0  ;;  %v643_v2 = vsub.f32 %v6304_v61, %v6307_v62 }
  0x32   : > { %v270_v5 = vld.sshfl [vmem:[#allocation1] sm:$0xff pattern:$0x75316420]  ;;  %v271_v6 = vld.sshfl [vmem:[#allocation1 + $0x8] sm:$0xff pattern:$0x75316420] }
  0x33   : > { %243 = vrot.lane.b32.xlu1 %v238_v4, %s6103_s30  ;;  %280 = vst [vmem:[#allocation1] ss:$2 sm:$0xff] %v6180_v0  ;;  %274 = vrot.lane.b32.xlu2 %v270_v5, %s6104_s4 }
  0x3a   : > { %v282_v7 = vld.sshfl [vmem:[#allocation1 + $0x8] sm:$0xff pattern:$0x75316420]  ;;  %v281_v8 = vld.sshfl [vmem:[#allocation1] sm:$0xff pattern:$0x75316420] }
  0x3b   : > { %287 = vrot.lane.b32.xlu1 %v282_v7, %s6105_s5  ;;  %285 = vrot.lane.b32.xlu0 %v281_v8, %s6105_s5  ;;  %1521 = vst [vmem:[#allocation1] ss:$2 sm:$0xff] %v6180_v0 }
  0x3c   : > { %276 = vrot.lane.b32.xlu2 %v271_v6, %s6104_s4 }
  0x8d   : > { %v275_v11 = vpop.permute.xlu2 %274 }
  0x95   : > { %v230_v10 = vpop.permute.xlu0 %229 }
  0x96   : > { %v277_v20 = vpop.permute.xlu2 %276 }
  0x97   : > { %v6212_v22 = vsel %vm200_vm1, %v275_v11, %v277_v20  ;;  %v279_v39 = vsel %vm200_vm1, %v277_v20, %v275_v11 }
  0x98   : > { %v320_v23 = vsel %vm315_vm3, %v6212_v22, 0 }
  0x99   : > { %v483_v26 = vand.u32 4294901760, %v320_v23 }
  0x9b   : > { %v510_v33 = vsub.f32 %v320_v23, %v483_v26 }
  0x9d   : > { %v242_v15 = vpop.permute.xlu1 %241  ;;  %v232_v21 = vpop.permute.xlu0 %231  ;;  %v511_v37 = vand.u32 4294901760, %v510_v33 }
  0x9e   : > { %v234_v28 = vsel %vm233_vm2, %v230_v10, %v232_v21  ;;  %v235_v30 = vsel %vm233_vm2, %v232_v21, %v230_v10 }
  0x9f   : > { %v512_v40 = vsub.f32 %v510_v33, %v511_v37 }
  0xa1   : > { %v513_v50 = vand.u32 4294901760, %v512_v40 }
  0xa5   : > { %v244_v29 = vpop.permute.xlu1 %243 }
  0xa6   : > { %v246_v31 = vsel %vm245_vm4, %v242_v15, %v244_v29  ;;  %v247_v32 = vsel %vm245_vm4, %v244_v29, %v242_v15  ;;  %v644_v15 = vand.u32 4294901760, %v643_v2 }
  0xa7   : > { %v6236_v34 = vsel %vm6217_vm5, %v246_v31, %v235_v30  ;;  %v6240_v35 = vsel %vm6221_vm6, %v247_v32, %v234_v28  ;;  %v6271_v46 = vsel %vm6249_vm8, %v234_v28, %v247_v32  ;;  %v6282_v48 = vsel %vm6255_vm9, %v235_v30, %v246_v31 }
  0xa8   : > { %252 = vrot.lane.b32.xlu2 %v6236_v34, %s6104_s4  ;;  %258 = vrot.lane.b32.xlu1 %v6236_v34, %s6105_s5  ;;  %v1222_v2 = vsel %vm315_vm3, %v6236_v34, 0 }
  0xa9   : > { %254 = vrot.lane.b32.xlu0 %v6240_v35, %s6104_s4 }
  0xad   : > { %v6259_v43 = vpop.permute.xlu1 %287  ;;  %v6261_v44 = vpop.permute.xlu0 %285 }
  0xae   : > { %v6267_v45 = vsel %vm262_vm7, %v6261_v44, %v6259_v43 }
  0xaf   : > { %v291_v47 = vsel %vm200_vm1, %v6267_v45, %v279_v39 }
  0xb0   : > { %260 = vrot.lane.b32.xlu2 %v6240_v35, %s6105_s5  ;;  %297 = vrot.lane.b32.xlu1 %v6271_v46, %s6104_s4  ;;  %v317_v49 = vsel %vm315_vm3, %v291_v47, 0 }
  0xb1   : > { %295 = vrot.lane.b32.xlu0 %v6282_v48, %s6104_s4  ;;  %v337_v52 = vand.u32 4294901760, %v317_v49 }
  0xb3   : > { %338 = vmatpush.msra.mxu0 %v337_v52  ;;  %v364_v53 = vsub.f32 %v317_v49, %v337_v52  ;;  %414 = vmatpush.msra.mxu3 %v337_v52 }
  0xb4   : > { %344 = vmatmul.f32.vlgmr.msra.gmra.mxu0 %v343_v51  ;;  %418 = vmatmul.f32.vlgmr.msra.gmra.mxu3 %v341_v36 }
  0xb5   : > { %514 = vmatpush.msrb.mxu3 %v513_v50  ;;  %v365_v54 = vand.u32 4294901760, %v364_v53  ;;  %391 = vmatpush.msra.mxu2 %v364_v53 }
  0xb6   : > { %394 = vmatmul.f32.vlgmr.msra.gmra.mxu2 %v340_v27 }
  0xb7   : > { %484 = vmatpush.msrb.mxu2 %v483_v26  ;;  %608 = vmatpush.msra.mxu3 %v483_v26  ;;  %v366_v55 = vsub.f32 %v364_v53, %v365_v54 }
  0xb8   : > { %440 = vmatpush.msrb.mxu0 %v365_v54  ;;  %301 = vrot.lane.b32.xlu2 %v6282_v48, %s6105_s5 }
  0xb9   : > { %303 = vrot.lane.b32.xlu0 %v6271_v46, %s6105_s5  ;;  %v367_v56 = vand.u32 4294901760, %v366_v55  ;;  %586 = vmatpush.msra.mxu2 %v511_v37 }
  0xba   : > { %537 = vmatpush.msra.mxu0 %v510_v33 }
  0xbb   : > { %368 = vmatpush.msra.mxu1 %v367_v56 }
  0xbc   : > { %442 = vmatmul.f32.vlgmr.msrb.gmra.mxu0 %v6206_v19  ;;  %370 = vmatmul.f32.vlgmr.msra.gmra.mxu1 %v6206_v19 }
  0xbd   : > { %462 = vmatpush.msrb.mxu1 %v337_v52  ;;  %516 = vmatmul.f32.vlgmr.msrb.gmra.mxu3 %v6206_v19 }
  0xbe   : > { %490 = vmatmul.f32.vlgmr.msrb.gmra.mxu2 %v343_v51 }
  0xbf   : > { %560 = vmatpush.msra.mxu1 %v483_v26 }
  0xc4   : > { %540 = vmatmul.f32.vlgmr.msra.gmra.mxu0 %v340_v27  ;;  %464 = vmatmul.f32.vlgmr.msrb.gmra.mxu1 %v6206_v19  ;;  %v916_v27 = vsel %vm311_vm0, %v206_v18, 0 }
  0xc5   : > { %610 = vmatmul.f32.vlgmr.msra.gmra.mxu3 %v6206_v19 }
  0xc6   : > { %588 = vmatmul.f32.vlgmr.msra.gmra.mxu2 %v6206_v19 }
  0xcc   : > { %564 = vmatmul.f32.vlgmr.msra.gmra.mxu1 %v341_v36  ;;  %v6345_v36 = vand.u32 4294901760, %v916_v27 }
  0xce   : > { %v6351_v41 = vsub.f32 %v916_v27, %v6345_v36 }
  0xd0   : > { %v6371_v55 = vand.u32 4294901760, %v6351_v41 }
 0x102   : > { %v253_v60 = vpop.permute.xlu2 %252 }
 0x10a   : > { %v261_v63 = vpop.permute.xlu2 %260 }
 0x112   : > { %v6353_v47 = vpop.permute.xlu2 %301 }
 0x11a   : > { %v259_v1 = vpop.permute.xlu1 %258 }
 0x11b   : > { %v6313_v3 = vsel %vm262_vm7, %v259_v1, %v261_v63  ;;  %v264_v4 = vsel %vm262_vm7, %v261_v63, %v259_v1  ;;  %v255_v5 = vpop.permute.xlu0 %254 }
 0x11c   : > { %v256_v6 = vsel %vm200_vm1, %v253_v60, %v255_v5  ;;  %v257_v7 = vsel %vm200_vm1, %v255_v5, %v253_v60  ;;  %v944_v60 = vsub.f32 %v6351_v41, %v6371_v55 }
 0x11d   : > { %v265_v8 = vsel %vm200_vm1, %v6313_v3, %v257_v7  ;;  %v6327_v9 = vsel %vm203_vm10, %v256_v6, %v264_v4  ;;  %v621_v10 = vsel %vm315_vm3, %v256_v6, 0  ;;  %v207_v6 = vld [vmem:[%s7243_s1 + $0xc] sm:$0xf]  ;;  %v1242_v7 = vand.u32 4294901760, %v1222_v2 }
 0x11e   : > { %v618_v11 = vsel %vm315_vm3, %v265_v8, 0  ;;  %v784_v14 = vand.u32 4294901760, %v621_v10  ;;  %v945_v4 = vand.u32 4294901760, %v944_v60  ;;  %v1219_v34 = vsel %vm311_vm0, %v207_v6, 0 }
 0x11f   : > { %v638_v16 = vand.u32 4294901760, %v618_v11 }
 0x120   : > { %v811_v17 = vsub.f32 %v621_v10, %v784_v14  ;;  %v6395_v10 = vand.u32 4294901760, %v1219_v34 }
 0x121   : > { %v665_v19 = vsub.f32 %v618_v11, %v638_v16  ;;  %639 = vmatpush.msrb.mxu0 %v638_v16  ;;  %715 = vmatpush.msrb.mxu3 %v638_v16 }
 0x122   : > { %645 = vmatmul.f32.vlgmr.msrb.gmra.mxu0 %v644_v15  ;;  %719 = vmatmul.f32.vlgmr.msrb.gmra.mxu3 %v6307_v62  ;;  %v298_v20 = vpop.permute.xlu1 %297  ;;  %v812_v21 = vand.u32 4294901760, %v811_v17 }
 0x123   : > { %692 = vmatpush.msrb.mxu2 %v665_v19  ;;  %v296_v23 = vpop.permute.xlu0 %295  ;;  %v666_v26 = vand.u32 4294901760, %v665_v19 }
 0x124   : > { %v6338_v28 = vsel %vm200_vm1, %v296_v23, %v298_v20  ;;  %695 = vmatmul.f32.vlgmr.msrb.gmra.mxu2 %v6304_v61  ;;  %v813_v29 = vsub.f32 %v811_v17, %v812_v21  ;;  %v300_v50 = vsel %vm200_vm1, %v298_v20, %v296_v23  ;;  %v1523_v23 = vld.sshfl [vmem:[#allocation1 + $0x8] sm:$0xff pattern:$0x75316420] }
 0x125   : > { %v922_v30 = vsel %vm315_vm3, %v6338_v28, 0  ;;  %785 = vmatpush.msra.mxu2 %v784_v14  ;;  %741 = vmatpush.msra.mxu0 %v666_v26  ;;  %v667_v31 = vsub.f32 %v665_v19, %v666_v26  ;;  %v1529_v27 = vsel %vm315_vm3, %v1523_v23, 0 }
 0x126   : > { %v6343_v32 = vand.u32 4294901760, %v922_v30  ;;  %v814_v33 = vand.u32 4294901760, %v813_v29 }
 0x127   : > { %887 = vmatpush.msrb.mxu2 %v812_v21  ;;  %838 = vmatpush.msrb.mxu0 %v811_v17  ;;  %v668_v37 = vand.u32 4294901760, %v667_v31  ;;  %v1522_v21 = vld.sshfl [vmem:[#allocation1] sm:$0xff pattern:$0x75316420]  ;;  %v208_v31 = vld [vmem:[%s7243_s1 + $0x10] sm:$0xf] }
 0x128   : > { %v1112_v39 = vsub.f32 %v922_v30, %v6343_v32  ;;  %815 = vmatpush.msra.mxu3 %v814_v33  ;;  %v1527_v26 = vsel %vm315_vm3, %v1522_v21, 0  ;;  %v1525_v33 = vsel %vm311_vm0, %v208_v31, 0 }
 0x129   : > { %669 = vmatpush.msrb.mxu1 %v668_v37  ;;  %v1546_v30 = vand.u32 4294901760, %v1527_v26 }
 0x12a   : > { %909 = vmatpush.msrb.mxu3 %v784_v14  ;;  %v1113_v40 = vand.u32 4294901760, %v1112_v39  ;;  %671 = vmatmul.f32.vlgmr.msrb.gmra.mxu1 %v6301_v59 }
 0x12b   : > { %743 = vmatmul.f32.vlgmr.msra.gmra.mxu0 %v6301_v59  ;;  %763 = vmatpush.msra.mxu1 %v638_v16  ;;  %v6356_v49 = vpop.permute.xlu0 %303 }
 0x12c   : > { %817 = vmatmul.f32.vlgmr.msra.gmra.mxu3 %v6301_v59  ;;  %v6364_v51 = vsel %vm262_vm7, %v6353_v47, %v6356_v49  ;;  %791 = vmatmul.f32.vlgmr.msra.gmra.mxu2 %v644_v15  ;;  %v1114_v54 = vsub.f32 %v1112_v39, %v1113_v40 }
 0x12d   : > { %861 = vmatpush.msrb.mxu1 %v784_v14  ;;  %v307_v52 = vsel %vm200_vm1, %v6364_v51, %v300_v50 }
 0x12e   : > { %v919_v53 = vsel %vm315_vm3, %v307_v52, 0  ;;  %v1115_v58 = vand.u32 4294901760, %v1114_v54 }
 0x12f   : > { %v939_v56 = vand.u32 4294901760, %v919_v53 }
 0x131   : > { %v966_v57 = vsub.f32 %v919_v53, %v939_v56  ;;  %940 = vmatpush.msra.mxu0 %v939_v56  ;;  %1016 = vmatpush.msra.mxu3 %v939_v56 }
 0x132   : > { %765 = vmatmul.f32.vlgmr.msra.gmra.mxu1 %v6301_v59 }
 0x133   : > { %841 = vmatmul.f32.vlgmr.msrb.gmra.mxu0 %v6304_v61  ;;  %993 = vmatpush.msra.mxu2 %v966_v57  ;;  %v967_v63 = vand.u32 4294901760, %v966_v57  ;;  %v1225_v61 = vsel %vm315_vm3, %v6240_v35, 0  ;;  %v1269_v35 = vsub.f32 %v1222_v2, %v1242_v7 }
 0x134   : > { %911 = vmatmul.f32.vlgmr.msrb.gmra.mxu3 %v6301_v59  ;;  %889 = vmatmul.f32.vlgmr.msrb.gmra.mxu2 %v6301_v59  ;;  %v6387_v8 = vand.u32 4294901760, %v1225_v61 }
 0x135   : > { %1116 = vmatpush.msrb.mxu3 %v1115_v58  ;;  %1086 = vmatpush.msrb.mxu2 %v6343_v32  ;;  %v968_v1 = vsub.f32 %v966_v57, %v967_v63  ;;  %v1270_v11 = vand.u32 4294901760, %v1269_v35  ;;  %v1829_v58 = vsel %vm315_vm3, %v6282_v48, 0 }
 0x136   : > { %1042 = vmatpush.msrb.mxu0 %v967_v63  ;;  %v1415_v59 = vsub.f32 %v1225_v61, %v6387_v8  ;;  %v1832_v63 = vsel %vm315_vm3, %v6271_v46, 0  ;;  %v1849_v2 = vand.u32 4294901760, %v1829_v58 }
 0x137   : > { %v969_v5 = vand.u32 4294901760, %v968_v1  ;;  %v1271_v15 = vsub.f32 %v1269_v35, %v1270_v11  ;;  %v209_v1 = vld [vmem:[%s7243_s1 + $0x14] sm:$0xf]  ;;  %v6436_v61 = vand.u32 4294901760, %v1832_v63 }
 0x138   : > { %v1416_v14 = vand.u32 4294901760, %v1415_v59  ;;  %v1876_v48 = vsub.f32 %v1829_v58, %v1849_v2 }
 0x139   : > { %970 = vmatpush.msra.mxu1 %v969_v5  ;;  %v1272_v18 = vand.u32 4294901760, %v1271_v15  ;;  %v2022_v46 = vsub.f32 %v1832_v63, %v6436_v61 }
 0x13a   : > { %865 = vmatmul.f32.vlgmr.msrb.gmra.mxu1 %v6307_v62  ;;  %v1245_v62 = vsub.f32 %v1219_v34, %v6395_v10  ;;  %v1417_v16 = vsub.f32 %v1415_v59, %v1416_v14  ;;  %v1877_v6 = vand.u32 4294901760, %v1876_v48 }
 0x13b   : > { %946 = vmatmul.f32.vlgmr.msra.gmra.mxu0 %v945_v4  ;;  %1064 = vmatpush.msrb.mxu1 %v939_v56 }
 0x13c   : > { %1020 = vmatmul.f32.vlgmr.msra.gmra.mxu3 %v6371_v55  ;;  %1139 = vmatpush.msra.mxu0 %v1112_v39  ;;  %v1246_v17 = vand.u32 4294901760, %v1245_v62  ;;  %v1418_v19 = vand.u32 4294901760, %v1417_v16  ;;  %v6418_v39 = vand.u32 4294901760, %v1525_v33  ;;  %v1878_v34 = vsub.f32 %v1876_v48, %v1877_v6 }
 0x13d   : > { %1210 = vmatpush.msra.mxu3 %v6343_v32  ;;  %996 = vmatmul.f32.vlgmr.msra.gmra.mxu2 %v6351_v41  ;;  %v2135_v16 = vsel %vm315_vm3, %v6327_v9, 0 }
 0x13e   : > { %1188 = vmatpush.msra.mxu2 %v1113_v40  ;;  %v1247_v20 = vsub.f32 %v1245_v62, %v1246_v17  ;;  %v1549_v50 = vsub.f32 %v1525_v33, %v6418_v39 }
 0x140   : > { %v1248_v29 = vand.u32 4294901760, %v1247_v20  ;;  %v1550_v54 = vand.u32 4294901760, %v1549_v50  ;;  %v6464_v20 = vpop.f32.mrf.mxu0 }
 0x142   : > { %972 = vmatmul.f32.vlgmr.msra.gmra.mxu1 %v6345_v36  ;;  %v1551_v57 = vsub.f32 %v1549_v50, %v1550_v54 }
 0x143   : > { %1044 = vmatmul.f32.vlgmr.msrb.gmra.mxu0 %v6345_v36  ;;  %1162 = vmatpush.msra.mxu1 %v6343_v32  ;;  %v6412_v32 = vand.u32 4294901760, %v1529_v27 }
 0x144   : > { %1118 = vmatmul.f32.vlgmr.msrb.gmra.mxu3 %v6345_v36  ;;  %1243 = vmatpush.msrb.mxu0 %v1242_v7  ;;  %v1552_v60 = vand.u32 4294901760, %v1551_v57 }
 0x145   : > { %1319 = vmatpush.msrb.mxu3 %v1242_v7  ;;  %1092 = vmatmul.f32.vlgmr.msrb.gmra.mxu2 %v945_v4  ;;  %v1719_v37 = vsub.f32 %v1529_v27, %v6412_v32  ;;  %v1826_v4 = vsel %vm311_vm0, %v209_v1, 0 }
 0x146   : > { %1296 = vmatpush.msrb.mxu2 %v1269_v35  ;;  %v6441_v5 = vand.u32 4294901760, %v1826_v4 }
 0x148   : > { %v6485_v33 = vpop.f32.mrf.mxu0 }
 0x14a   : > { %1066 = vmatmul.f32.vlgmr.msrb.gmra.mxu1 %v6345_v36 }
 0x14b   : > { %1142 = vmatmul.f32.vlgmr.msra.gmra.mxu0 %v6351_v41  ;;  %1273 = vmatpush.msrb.mxu1 %v1272_v18  ;;  %v1720_v41 = vand.u32 4294901760, %v1719_v37 }
 0x14c   : > { %1212 = vmatmul.f32.vlgmr.msra.gmra.mxu3 %v6345_v36  ;;  %1345 = vmatpush.msra.mxu0 %v1270_v11 }
 0x14d   : > { %1419 = vmatpush.msra.mxu3 %v1418_v19  ;;  %1190 = vmatmul.f32.vlgmr.msra.gmra.mxu2 %v6345_v36  ;;  %v1573_v36 = vsub.f32 %v1527_v26, %v1546_v30  ;;  %v1721_v52 = vsub.f32 %v1719_v37, %v1720_v41  ;;  %v6462_v19 = vand.u32 4294901760, %v2135_v16  ;;  %v6472_v26 = vpop.f32.mrf.mxu3 }
 0x14e   : > { %1389 = vmatpush.msra.mxu2 %v6387_v8 }
 0x14f   : > { %v1574_v40 = vand.u32 4294901760, %v1573_v36  ;;  %v2325_v21 = vsub.f32 %v2135_v16, %v6462_v19 }
 0x151   : > { %v1575_v53 = vsub.f32 %v1573_v36, %v1574_v40 }
 0x152   : > { %1166 = vmatmul.f32.vlgmr.msra.gmra.mxu1 %v6371_v55  ;;  %v1722_v55 = vand.u32 4294901760, %v1721_v52 }
 0x153   : > { %1249 = vmatmul.f32.vlgmr.msrb.gmra.mxu0 %v1248_v29  ;;  %1367 = vmatpush.msra.mxu1 %v1242_v7  ;;  %v1576_v56 = vand.u32 4294901760, %v1575_v53  ;;  %v2023_v7 = vand.u32 4294901760, %v2022_v46 }
 0x154   : > { %1323 = vmatmul.f32.vlgmr.msrb.gmra.mxu3 %v1246_v17  ;;  %1442 = vmatpush.msrb.mxu0 %v1415_v59 }
 0x155   : > { %1513 = vmatpush.msrb.mxu3 %v6387_v8  ;;  %1299 = vmatmul.f32.vlgmr.msrb.gmra.mxu2 %v1245_v62  ;;  %v2024_v35 = vsub.f32 %v2022_v46, %v2023_v7 }
 0x156   : > { %1491 = vmatpush.msrb.mxu2 %v1416_v14 }
 0x157   : > { %v2025_v11 = vand.u32 4294901760, %v2024_v35 }
 0x15a   : > { %1275 = vmatmul.f32.vlgmr.msrb.gmra.mxu1 %v6395_v10 }
 0x15b   : > { %1347 = vmatmul.f32.vlgmr.msra.gmra.mxu0 %v6395_v10  ;;  %1465 = vmatpush.msrb.mxu1 %v6387_v8  ;;  %v1852_v8 = vsub.f32 %v1826_v4, %v6441_v5 }
 0x15c   : > { %1421 = vmatmul.f32.vlgmr.msra.gmra.mxu3 %v6395_v10  ;;  %1547 = vmatpush.msra.mxu0 %v1546_v30 }
 0x15d   : > { %1623 = vmatpush.msra.mxu3 %v1546_v30  ;;  %1395 = vmatmul.f32.vlgmr.msra.gmra.mxu2 %v1248_v29  ;;  %v6448_v59 = vand.u32 4294901760, %v1852_v8  ;;  %v6474_v29 = vpop.f32.mrf.mxu2 }
 0x15e   : > { %1600 = vmatpush.msra.mxu2 %v1573_v36 }
 0x15f   : > { %v1854_v14 = vsub.f32 %v1852_v8, %v6448_v59 }
 0x161   : > { %v1855_v15 = vand.u32 4294901760, %v1854_v14 }
 0x162   : > { %1369 = vmatmul.f32.vlgmr.msra.gmra.mxu1 %v6395_v10 }
 0x163   : > { %1445 = vmatmul.f32.vlgmr.msrb.gmra.mxu0 %v1245_v62  ;;  %1577 = vmatpush.msra.mxu1 %v1576_v56  ;;  %v2132_v62 = vsel %vm315_vm3, %v6313_v3, 0  ;;  %v6511_v56 = vpop.f32.mrf.mxu0 }
 0x164   : > { %1515 = vmatmul.f32.vlgmr.msrb.gmra.mxu3 %v6395_v10  ;;  %1649 = vmatpush.msrb.mxu0 %v1574_v40  ;;  %v2152_v18 = vand.u32 4294901760, %v2132_v62  ;;  %v290_v40 = vsel %vm262_vm7, %v6259_v43, %v6261_v44  ;;  %v2435_v44 = vsel %vm315_vm3, %v6267_v45, 0 }
 0x165   : > { %1723 = vmatpush.msrb.mxu3 %v1722_v55  ;;  %1493 = vmatmul.f32.vlgmr.msrb.gmra.mxu2 %v6395_v10  ;;  %v1879_v10 = vand.u32 4294901760, %v1878_v34  ;;  %v294_v55 = vsel %vm203_vm10, %v6212_v22, %v290_v40  ;;  %v211_v22 = vld [vmem:[%s7243_s1 + $0x1c] sm:$0xf] }
 0x166   : > { %1693 = vmatpush.msrb.mxu2 %v6412_v32  ;;  %v2179_v9 = vsub.f32 %v2132_v62, %v2152_v18  ;;  %v2438_v58 = vsel %vm315_vm3, %v294_v55, 0  ;;  %v2432_v1 = vsel %vm311_vm0, %v211_v22, 0 }
 0x167   : > { %v6517_v63 = vand.u32 4294901760, %v2438_v58 }
 0x168   : > { %v2180_v27 = vand.u32 4294901760, %v2179_v9 }
 0x169   : > { %v2628_v4 = vsub.f32 %v2438_v58, %v6517_v63 }
 0x16a   : > { %1469 = vmatmul.f32.vlgmr.msrb.gmra.mxu1 %v1246_v17  ;;  %v210_v17 = vld [vmem:[%s7243_s1 + $0x18] sm:$0xf]  ;;  %v2181_v36 = vsub.f32 %v2179_v9, %v2180_v27 }
 0x16b   : > { %1553 = vmatmul.f32.vlgmr.msra.gmra.mxu0 %v1552_v60  ;;  %1671 = vmatpush.msrb.mxu1 %v1546_v30  ;;  %v2129_v3 = vsel %vm311_vm0, %v210_v17, 0  ;;  %v2326_v30 = vand.u32 4294901760, %v2325_v21 }
 0x16c   : > { %1627 = vmatmul.f32.vlgmr.msra.gmra.mxu3 %v1550_v54  ;;  %1746 = vmatpush.msra.mxu0 %v1719_v37  ;;  %v6470_v23 = vand.u32 4294901760, %v2129_v3 }
 0x16d   : > { %1817 = vmatpush.msra.mxu3 %v6412_v32  ;;  %1603 = vmatmul.f32.vlgmr.msra.gmra.mxu2 %v1549_v50  ;;  %v2327_v37 = vsub.f32 %v2325_v21, %v2326_v30 }
 0x16e   : > { %1795 = vmatpush.msra.mxu2 %v1720_v41  ;;  %v6479_v31 = vsub.f32 %v2129_v3, %v6470_v23  ;;  %v2182_v41 = vand.u32 4294901760, %v2181_v36 }
 0x16f   : > { %v2328_v52 = vand.u32 4294901760, %v2327_v37 }
 0x172   : > { %1579 = vmatmul.f32.vlgmr.msra.gmra.mxu1 %v6418_v39 }
 0x173   : > { %1651 = vmatmul.f32.vlgmr.msrb.gmra.mxu0 %v6418_v39  ;;  %1769 = vmatpush.msra.mxu1 %v6412_v32  ;;  %v6483_v32 = vpop.f32.mrf.mxu1 }
 0x174   : > { %1725 = vmatmul.f32.vlgmr.msrb.gmra.mxu3 %v6418_v39  ;;  %1850 = vmatpush.msrb.mxu0 %v1849_v2 }
 0x175   : > { %1926 = vmatpush.msrb.mxu3 %v1849_v2  ;;  %1699 = vmatmul.f32.vlgmr.msrb.gmra.mxu2 %v1552_v60  ;;  %v2455_v60 = vand.u32 4294901760, %v2435_v44 }
 0x176   : > { %1903 = vmatpush.msrb.mxu2 %v1876_v48  ;;  %v6529_v48 = vand.u32 4294901760, %v2432_v1 }
 0x17a   : > { %1673 = vmatmul.f32.vlgmr.msrb.gmra.mxu1 %v6418_v39 }
 0x17b   : > { %1749 = vmatmul.f32.vlgmr.msra.gmra.mxu0 %v1549_v50  ;;  %1880 = vmatpush.msrb.mxu1 %v1879_v10  ;;  %v6494_v50 = vpop.f32.mrf.mxu3  ;;  %v6506_v43 = vpop.f32.mrf.mxu1 }
 0x17c   : > { %1819 = vmatmul.f32.vlgmr.msra.gmra.mxu3 %v6418_v39  ;;  %1952 = vmatpush.msra.mxu0 %v1877_v6 }
 0x17d   : > { %2026 = vmatpush.msra.mxu3 %v2025_v11  ;;  %1797 = vmatmul.f32.vlgmr.msra.gmra.mxu2 %v6418_v39  ;;  %v6488_v39 = vand.u32 4294901760, %v6479_v31 }
 0x17e   : > { %1996 = vmatpush.msra.mxu2 %v6436_v61 }
 0x17f   : > { %v2157_v53 = vsub.f32 %v6479_v31, %v6488_v39 }
 0x181   : > { %v2158_v57 = vand.u32 4294901760, %v2157_v53 }
 0x182   : > { %1773 = vmatmul.f32.vlgmr.msra.gmra.mxu1 %v1550_v54  ;;  %v6500_v54 = vpop.f32.mrf.mxu2 }
 0x183   : > { %1856 = vmatmul.f32.vlgmr.msrb.gmra.mxu0 %v1855_v15  ;;  %1974 = vmatpush.msra.mxu1 %v1849_v2  ;;  %v6521_v45 = vpop.f32.mrf.mxu3  ;;  %v2482_v2 = vsub.f32 %v2435_v44, %v2455_v60 }
 0x184   : > { %1930 = vmatmul.f32.vlgmr.msrb.gmra.mxu3 %v6448_v59  ;;  %2049 = vmatpush.msrb.mxu0 %v2022_v46  ;;  %v6531_v46 = vpop.f32.mrf.mxu1 }
 0x185   : > { %2120 = vmatpush.msrb.mxu3 %v6436_v61  ;;  %1906 = vmatmul.f32.vlgmr.msrb.gmra.mxu2 %v1852_v8  ;;  %v2483_v6 = vand.u32 4294901760, %v2482_v2 }
 0x186   : > { %2098 = vmatpush.msrb.mxu2 %v2023_v7  ;;  %v2629_v7 = vand.u32 4294901760, %v2628_v4 }
 0x187   : > { %v2484_v35 = vsub.f32 %v2482_v2, %v2483_v6 }
 0x189   : > { %v2485_v16 = vand.u32 4294901760, %v2484_v35 }
 0x18a   : > { %1882 = vmatmul.f32.vlgmr.msrb.gmra.mxu1 %v6441_v5 }
 0x18b   : > { %1954 = vmatmul.f32.vlgmr.msra.gmra.mxu0 %v6441_v5  ;;  %2072 = vmatpush.msrb.mxu1 %v6436_v61  ;;  %v6526_v61 = vpop.f32.mrf.mxu2 }
 0x18c   : > { %2028 = vmatmul.f32.vlgmr.msra.gmra.mxu3 %v6441_v5  ;;  %2153 = vmatpush.msra.mxu0 %v2152_v18 }
 0x18d   : > { %2229 = vmatpush.msra.mxu3 %v2152_v18  ;;  %2002 = vmatmul.f32.vlgmr.msra.gmra.mxu2 %v1855_v15  ;;  %v306_v15 = vsel %vm262_vm7, %v6356_v49, %v6353_v47  ;;  %v2738_v47 = vsel %vm315_vm3, %v6364_v51, 0 }
 0x18e   : > { %2206 = vmatpush.msra.mxu2 %v2179_v9 }
 0x192   : > { %1976 = vmatmul.f32.vlgmr.msra.gmra.mxu1 %v6441_v5 }
 0x193   : > { %2052 = vmatmul.f32.vlgmr.msrb.gmra.mxu0 %v1852_v8  ;;  %2183 = vmatpush.msra.mxu1 %v2182_v41  ;;  %v6538_v8 = vsub.f32 %v2432_v1, %v6529_v48 }
 0x194   : > { %2122 = vmatmul.f32.vlgmr.msrb.gmra.mxu3 %v6441_v5  ;;  %2255 = vmatpush.msrb.mxu0 %v2180_v27 }
 0x195   : > { %2329 = vmatpush.msrb.mxu3 %v2328_v52  ;;  %2100 = vmatmul.f32.vlgmr.msrb.gmra.mxu2 %v6441_v5  ;;  %v6545_v10 = vand.u32 4294901760, %v6538_v8 }
 0x196   : > { %2299 = vmatpush.msrb.mxu2 %v6462_v19 }
 0x19a   : > { %2076 = vmatmul.f32.vlgmr.msrb.gmra.mxu1 %v6448_v59  ;;  %v2630_v59 = vsub.f32 %v2628_v4, %v2629_v7 }
 0x19b   : > { %2159 = vmatmul.f32.vlgmr.msra.gmra.mxu0 %v2158_v57  ;;  %2277 = vmatpush.msrb.mxu1 %v2152_v18  ;;  %v2460_v18 = vsub.f32 %v6538_v8, %v6545_v10 }
 0x19c   : > { %2233 = vmatmul.f32.vlgmr.msra.gmra.mxu3 %v6488_v39  ;;  %2352 = vmatpush.msra.mxu0 %v2325_v21  ;;  %v2631_v17 = vand.u32 4294901760, %v2630_v59 }
 0x19d   : > { %2423 = vmatpush.msra.mxu3 %v6462_v19  ;;  %2209 = vmatmul.f32.vlgmr.msra.gmra.mxu2 %v6479_v31  ;;  %v2461_v3 = vand.u32 4294901760, %v2460_v18 }
 0x19e   : > { %2401 = vmatpush.msra.mxu2 %v2326_v30 }
 0x19f   : > { %v6533_v5 = vpop.f32.mrf.mxu0 }
 0x1a2   : > { %2185 = vmatmul.f32.vlgmr.msra.gmra.mxu1 %v6470_v23 }
 0x1a3   : > { %2257 = vmatmul.f32.vlgmr.msrb.gmra.mxu0 %v6470_v23  ;;  %2375 = vmatpush.msra.mxu1 %v6462_v19  ;;  %v310_v19 = vsel %vm203_vm10, %v6338_v28, %v306_v15  ;;  %v212_v28 = vld [vmem:[%s7243_s1 + $0x20] sm:$0xf] }
 0x1a4   : > { %2331 = vmatmul.f32.vlgmr.msrb.gmra.mxu3 %v6470_v23  ;;  %2456 = vmatpush.msrb.mxu0 %v2455_v60  ;;  %v2741_v9 = vsel %vm315_vm3, %v310_v19, 0  ;;  %v2735_v51 = vsel %vm311_vm0, %v212_v28, 0 }
 0x1a5   : > { %2532 = vmatpush.msrb.mxu3 %v2455_v60  ;;  %2305 = vmatmul.f32.vlgmr.msrb.gmra.mxu2 %v2158_v57  ;;  %v6542_v34 = vpop.f32.mrf.mxu3  ;;  %v2760_v41 = vand.u32 4294901760, %v2735_v51 }
 0x1a6   : > { %2509 = vmatpush.msrb.mxu2 %v2482_v2 }
 0x1a7   : > { %v6547_v11 = vpop.f32.mrf.mxu1  ;;  %v6549_v14 = vpop.f32.mrf.mxu2  ;;  %v2761_v57 = vsub.f32 %v2735_v51, %v2760_v41 }
 0x1a8   : > { %v6551_v62 = vpop.f32.mrf.mxu0 }
 0x1a9   : > { %v2762_v1 = vand.u32 4294901760, %v2761_v57 }
 0x1aa   : > { %2279 = vmatmul.f32.vlgmr.msrb.gmra.mxu1 %v6470_v23 }
 0x1ab   : > { %2355 = vmatmul.f32.vlgmr.msra.gmra.mxu0 %v6479_v31  ;;  %2486 = vmatpush.msrb.mxu1 %v2485_v16  ;;  %v6581_v31 = vand.u32 4294901760, %v2741_v9  ;;  %v2763_v35 = vsub.f32 %v2761_v57, %v2762_v1 }
 0x1ac   : > { %2425 = vmatmul.f32.vlgmr.msra.gmra.mxu3 %v6470_v23  ;;  %2558 = vmatpush.msra.mxu0 %v2483_v6 }
 0x1ad   : > { %2632 = vmatpush.msra.mxu3 %v2631_v17  ;;  %2403 = vmatmul.f32.vlgmr.msra.gmra.mxu2 %v6470_v23  ;;  %v2758_v23 = vand.u32 4294901760, %v2738_v47  ;;  %v2931_v37 = vsub.f32 %v2741_v9, %v6581_v31  ;;  %v2764_v15 = vand.u32 4294901760, %v2763_v35 }
 0x1ae   : > { %2602 = vmatpush.msra.mxu2 %v6517_v63 }
 0x1af   : > { %v6569_v49 = vpop.f32.mrf.mxu3  ;;  %v6572_v21 = vpop.f32.mrf.mxu1  ;;  %v2785_v36 = vsub.f32 %v2738_v47, %v2758_v23  ;;  %v2932_v44 = vand.u32 4294901760, %v2931_v37 }
 0x1b0   : > { %7272 = vst [vmem:[#allocation12_spill] sm:$0xff] %v6572_v21  ;;  %v6574_v27 = vpop.f32.mrf.mxu2  ;;  %v6576_v30 = vpop.f32.mrf.mxu0 }
 0x1b1   : > { %v2786_v55 = vand.u32 4294901760, %v2785_v36 }
 0x1b2   : > { %2379 = vmatmul.f32.vlgmr.msra.gmra.mxu1 %v6488_v39 }
 0x1b3   : > { %2462 = vmatmul.f32.vlgmr.msrb.gmra.mxu0 %v2461_v3  ;;  %2580 = vmatpush.msra.mxu1 %v2455_v60  ;;  %v2787_v58 = vsub.f32 %v2785_v36, %v2786_v55  ;;  %v2933_v60 = vsub.f32 %v2931_v37, %v2932_v44 }
 0x1b4   : > { %2536 = vmatmul.f32.vlgmr.msrb.gmra.mxu3 %v6545_v10  ;;  %2655 = vmatpush.msrb.mxu0 %v2628_v4 }
 0x1b5   : > { %2726 = vmatpush.msrb.mxu3 %v6517_v63  ;;  %2512 = vmatmul.f32.vlgmr.msrb.gmra.mxu2 %v6538_v8 }
 0x1b6   : > { %2704 = vmatpush.msrb.mxu2 %v2629_v7  ;;  %v2788_v7 = vand.u32 4294901760, %v2787_v58 }
 0x1b7   : > { %v6589_v40 = vpop.f32.mrf.mxu3  ;;  %v6591_v52 = vpop.f32.mrf.mxu1 }
 0x1b8   : > { %7273 = vst [vmem:[#allocation13_spill] sm:$0xff] %v6589_v40  ;;  %v6593_v39 = vpop.f32.mrf.mxu2  ;;  %v6595_v53 = vpop.f32.mrf.mxu0 }
 0x1b9   : > { %7274 = vst [vmem:[#allocation14_spill] sm:$0xff] %v6593_v39 }
 0x1ba   : > { %2488 = vmatmul.f32.vlgmr.msrb.gmra.mxu1 %v6529_v48 }
 0x1bb   : > { %2560 = vmatmul.f32.vlgmr.msra.gmra.mxu0 %v6529_v48  ;;  %2678 = vmatpush.msrb.mxu1 %v6517_v63  ;;  %v2934_v63 = vand.u32 4294901760, %v2933_v60 }
 0x1bc   : > { %2634 = vmatmul.f32.vlgmr.msra.gmra.mxu3 %v6529_v48  ;;  %2759 = vmatpush.msra.mxu0 %v2758_v23 }
 0x1bd   : > { %2835 = vmatpush.msra.mxu3 %v2758_v23  ;;  %2608 = vmatmul.f32.vlgmr.msra.gmra.mxu2 %v2461_v3 }
 0x1be   : > { %2812 = vmatpush.msra.mxu2 %v2785_v36 }
 0x1bf   : > { %v6601_v22 = vpop.f32.mrf.mxu3  ;;  %v6603_v2 = vpop.f32.mrf.mxu1 }
 0x1c0   : > { %v6605_v4 = vpop.f32.mrf.mxu2  ;;  %v6607_v6 = vpop.f32.mrf.mxu0 }
 0x1c2   : > { %2582 = vmatmul.f32.vlgmr.msra.gmra.mxu1 %v6529_v48 }
 0x1c3   : > { %2658 = vmatmul.f32.vlgmr.msrb.gmra.mxu0 %v6538_v8  ;;  %2789 = vmatpush.msra.mxu1 %v2788_v7 }
 0x1c4   : > { %2728 = vmatmul.f32.vlgmr.msrb.gmra.mxu3 %v6529_v48  ;;  %2861 = vmatpush.msrb.mxu0 %v2786_v55 }
 0x1c5   : > { %2935 = vmatpush.msrb.mxu3 %v2934_v63  ;;  %2706 = vmatmul.f32.vlgmr.msrb.gmra.mxu2 %v6529_v48 }
 0x1c6   : > { %2905 = vmatpush.msrb.mxu2 %v6581_v31 }
 0x1c7   : > { %v6614_v59 = vpop.f32.mrf.mxu3  ;;  %v6616_v16 = vpop.f32.mrf.mxu1 }
 0x1c8   : > { %7275 = vst [vmem:[#allocation15_spill] sm:$0xff] %v6616_v16  ;;  %v6618_v17 = vpop.f32.mrf.mxu2  ;;  %v6620_v18 = vpop.f32.mrf.mxu0 }
 0x1ca   : > { %2682 = vmatmul.f32.vlgmr.msrb.gmra.mxu1 %v6545_v10 }
 0x1cb   : > { %2765 = vmatmul.f32.vlgmr.msra.gmra.mxu0 %v2764_v15  ;;  %2883 = vmatpush.msrb.mxu1 %v2758_v23 }
 0x1cc   : > { %2839 = vmatmul.f32.vlgmr.msra.gmra.mxu3 %v2762_v1  ;;  %2958 = vmatpush.msra.mxu0 %v2931_v37 }
 0x1cd   : > { %3029 = vmatpush.msra.mxu3 %v6581_v31  ;;  %2815 = vmatmul.f32.vlgmr.msra.gmra.mxu2 %v2761_v57 }
 0x1ce   : > { %3007 = vmatpush.msra.mxu2 %v2932_v44 }
 0x1cf   : > { %v6624_v48 = vpop.f32.mrf.mxu3  ;;  %v6626_v8 = vpop.f32.mrf.mxu1 }
 0x1d0   : > { %7276 = vst [vmem:[#allocation16_spill] sm:$0xff] %v6624_v48  ;;  %v6628_v19 = vpop.f32.mrf.mxu2  ;;  %v6630_v47 = vpop.f32.mrf.mxu0 }
 0x1d1   : > { %7277 = vst [vmem:[#allocation17_spill] sm:$0xff] %v6628_v19  ;;  %v518_v19 = vadd.f32 %v6494_v50, %v6500_v54 }
 0x1d2   : > { %2791 = vmatmul.f32.vlgmr.msra.gmra.mxu1 %v2760_v41 }
 0x1d3   : > { %2863 = vmatmul.f32.vlgmr.msrb.gmra.mxu0 %v2760_v41  ;;  %2981 = vmatpush.msra.mxu1 %v6581_v31 }
 0x1d4   : > { %2937 = vmatmul.f32.vlgmr.msrb.gmra.mxu3 %v2760_v41 }
 0x1d5   : > { %2911 = vmatmul.f32.vlgmr.msrb.gmra.mxu2 %v2764_v15 }
 0x1d7   : > { %v6633_v10 = vpop.f32.mrf.mxu3  ;;  %v6635_v3 = vpop.f32.mrf.mxu1 }
 0x1d8   : > { %v6637_v9 = vpop.f32.mrf.mxu2  ;;  %v6639_v28 = vpop.f32.mrf.mxu0 }
 0x1d9   : > { %7278 = vst [vmem:[#allocation18_spill] sm:$0xff] %v6639_v28 }
 0x1da   : > { %2885 = vmatmul.f32.vlgmr.msrb.gmra.mxu1 %v2760_v41 }
 0x1db   : > { %2961 = vmatmul.f32.vlgmr.msra.gmra.mxu0 %v2761_v57 }
 0x1dc   : > { %3031 = vmatmul.f32.vlgmr.msra.gmra.mxu3 %v2760_v41 }
 0x1dd   : > { %3009 = vmatmul.f32.vlgmr.msra.gmra.mxu2 %v2760_v41 }
 0x1df   : > { %v6641_v23 = vpop.f32.mrf.mxu3  ;;  %v6643_v51 = vpop.f32.mrf.mxu1 }
 0x1e0   : > { %7279 = vst [vmem:[#allocation19_spill] sm:$0xff] %v6643_v51  ;;  %v6645_v36 = vpop.f32.mrf.mxu2  ;;  %v6647_v31 = vpop.f32.mrf.mxu0 }
 0x1e2   : > { %2985 = vmatmul.f32.vlgmr.msra.gmra.mxu1 %v2762_v1 }
 0x1e7   : > { %v6649_v37 = vpop.f32.mrf.mxu3  ;;  %v6651_v55 = vpop.f32.mrf.mxu1 }
 0x1e8   : > { %7280 = vst [vmem:[#allocation20_spill] sm:$0xff] %v6649_v37  ;;  %v6653_v44 = vpop.f32.mrf.mxu2  ;;  %v6655_v58 = vpop.f32.mrf.mxu0 }
 0x1e9   : > { %7281 = vst [vmem:[#allocation21_spill] sm:$0xff] %v6653_v44 }
 0x1ef   : > { %v6657_v57 = vpop.f32.mrf.mxu3  ;;  %v6659_v41 = vpop.f32.mrf.mxu1 }
 0x1f0   : > { %v6661_v60 = vpop.f32.mrf.mxu2  ;;  %v6663_v7 = vpop.f32.mrf.mxu0 }
 0x1f1   : > { %7282 = vst [vmem:[#allocation22_spill] sm:$0xff] %v6663_v7 }
 0x1f7   : > { %v6665_v63 = vpop.f32.mrf.mxu3  ;;  %v6667_v35 = vpop.f32.mrf.mxu1 }
 0x1f8   : > { %7283 = vst [vmem:[#allocation23_spill] sm:$0xff] %v6667_v35  ;;  %v6669_v1 = vpop.f32.mrf.mxu2  ;;  %v6671_v15 = vpop.f32.mrf.mxu0 }
 0x1ff   : > { %v6673_v0 = vpop.f32.mrf.mxu3  ;;  %v6675_v13 = vpop.f32.mrf.mxu1 }
 0x200   : > { %7284 = vst [vmem:[#allocation24_spill] sm:$0xff] %v6673_v0  ;;  %v6677_v38 = vpop.f32.mrf.mxu2  ;;  %v1857_v42 = vpop.f32.mrf.mxu0 }
 0x201   : > { %7285 = vst [vmem:[#allocation25_spill] sm:$0xff] %v6675_v13 }
 0x202   : > { %7286 = vst [vmem:[#allocation26_spill] sm:$0xff] %v6677_v38 }
 0x207   : > { %v6679_v24 = vpop.f32.mrf.mxu3  ;;  %v1883_v25 = vpop.f32.mrf.mxu1 }
 0x208   : > { %7287 = vst [vmem:[#allocation27_spill] sm:$0xff] %v6679_v24  ;;  %v6681_v12 = vpop.f32.mrf.mxu2  ;;  %v6683_v37 = vpop.f32.mrf.mxu0 }
 0x209   : > { %7288 = vst [vmem:[#allocation28_spill] sm:$0xff] %v6683_v37 }
 0x20f   : > { %v6685_v40 = vpop.f32.mrf.mxu3  ;;  %v6687_v35 = vpop.f32.mrf.mxu1 }
 0x210   : > { %7289 = vst [vmem:[#allocation29_spill] sm:$0xff] %v6687_v35  ;;  %v6689_v51 = vpop.f32.mrf.mxu2  ;;  %v6691_v48 = vpop.f32.mrf.mxu0 }
 0x211   : > { %7290 = vst [vmem:[#allocation30_spill] sm:$0xff] %v6691_v48 }
 0x217   : > { %v6693_v0 = vpop.f32.mrf.mxu3  ;;  %v6695_v21 = vpop.f32.mrf.mxu1 }
 0x218   : > { %7291 = vst [vmem:[#allocation31_spill] sm:$0xff] %v6693_v0  ;;  %v6697_v38 = vpop.f32.mrf.mxu2  ;;  %v2160_v7 = vpop.f32.mrf.mxu0  ;;  %v372_v0 = vadd.f32 %v6483_v32, %v6464_v20 }
 0x219   : > { %7292 = vst [vmem:[#allocation32_spill] sm:$0xff] %v6695_v21 }
 0x21a   : > { %7293 = vst [vmem:[#allocation33_spill] sm:$0xff] %v6697_v38 }
 0x21f   : > { %v6699_v44 = vpop.f32.mrf.mxu3  ;;  %v2186_v16 = vpop.f32.mrf.mxu1 }
 0x220   : > { %7294 = vst [vmem:[#allocation34_spill] sm:$0xff] %v6699_v44  ;;  %v6701_v39 = vpop.f32.mrf.mxu2  ;;  %v6703_v37 = vpop.f32.mrf.mxu0 }
 0x221   : > { %7295 = vst [vmem:[#allocation35_spill] sm:$0xff] %v6703_v37  ;;  %v396_v37 = vadd.f32 %v6474_v29, %v372_v0 }
 0x227   : > { %v6705_v24 = vpop.f32.mrf.mxu3  ;;  %v6707_v35 = vpop.f32.mrf.mxu1 }
 0x228   : > { %7296 = vst [vmem:[#allocation36_spill] sm:$0xff] %v6705_v24  ;;  %v6709_v13 = vpop.f32.mrf.mxu2  ;;  %v6711_v48 = vpop.f32.mrf.mxu0  ;;  %v542_v24 = vadd.f32 %v6511_v56, %v518_v19 }
 0x229   : > { %7297 = vst [vmem:[#allocation37_spill] sm:$0xff] %v6707_v35  ;;  %v420_v35 = vadd.f32 %v6472_v26, %v396_v37 }
 0x22a   : > { %7298 = vst [vmem:[#allocation38_spill] sm:$0xff] %v6709_v13 }
 0x22b   : > { %7299 = vst [vmem:[#allocation39_spill] sm:$0xff] %v6711_v48 }
 0x22f   : > { %v6715_v38 = vpop.f32.mrf.mxu3  ;;  %v6717_v21 = vpop.f32.mrf.mxu1 }
 0x230   : > { %7300 = vst [vmem:[#allocation40_spill] sm:$0xff] %v6715_v38  ;;  %v6719_v44 = vpop.f32.mrf.mxu2  ;;  %v2463_v28 = vpop.f32.mrf.mxu0  ;;  %v444_v38 = vadd.f32 %v6485_v33, %v420_v35  ;;  %v974_v33 = vadd.f32 %v6603_v2, %v6595_v53  ;;  %v7307_v35 = vld [vmem:[#allocation25_spill] sm:$0xff] }
 0x231   : > { %7301 = vst [vmem:[#allocation41_spill] sm:$0xff] %v6717_v21 }
 0x232   : > { %7302 = vst [vmem:[#allocation42_spill] sm:$0xff] %v6719_v44  ;;  %v566_v44 = vadd.f32 %v6531_v46, %v542_v24  ;;  %v466_v21 = vadd.f32 %v6506_v43, %v444_v38  ;;  %v1277_v38 = vadd.f32 %v6635_v3, %v6630_v47  ;;  %v998_v46 = vadd.f32 %v6605_v4, %v974_v33  ;;  %v7311_v33 = vld [vmem:[#allocation15_spill] sm:$0xff] }
 0x233   : > { %v1884_v47 = vadd.f32 %v1883_v25, %v1857_v42  ;;  %v2030_v25 = vadd.f32 %v6685_v40, %v6689_v51  ;;  %v7303_v40 = vld [vmem:[#allocation38_spill] sm:$0xff]  ;;  %v7304_v51 = vld [vmem:[#allocation36_spill] sm:$0xff] }
 0x234   : > { %v590_v0 = vadd.f32 %v6526_v61, %v566_v44  ;;  %v647_v26 = vadd.f32 %v6533_v5, %v466_v21  ;;  %v1120_v5 = vadd.f32 %v6614_v59, %v6618_v17  ;;  %v1581_v21 = vadd.f32 %v6659_v41, %v6655_v58 }
 0x235   : > { %v1301_v2 = vadd.f32 %v6637_v9, %v1277_v38  ;;  %v1022_v59 = vadd.f32 %v6601_v22, %v998_v46  ;;  %v2187_v58 = vadd.f32 %v2186_v16, %v2160_v7  ;;  %v7312_v38 = vld [vmem:[#allocation21_spill] sm:$0xff]  ;;  %v7313_v46 = vld [vmem:[#allocation32_spill] sm:$0xff] }
 0x236   : > { %v612_v19 = vadd.f32 %v6521_v45, %v590_v0  ;;  %v673_v37 = vadd.f32 %v6547_v11, %v647_v26  ;;  %v1144_v17 = vadd.f32 %v6620_v18, %v1120_v5  ;;  %v1605_v44 = vadd.f32 %v6661_v60, %v1581_v21 }
 0x237   : > { %v6726_v48 = vpop.f32.mrf.mxu3  ;;  %v2489_v13 = vpop.f32.mrf.mxu1  ;;  %v1325_v41 = vadd.f32 %v6633_v10, %v1301_v2  ;;  %v2211_v60 = vadd.f32 %v6701_v39, %v2187_v58  ;;  %v7321_v58 = vld [vmem:[#allocation28_spill] sm:$0xff] }
 0x238   : > { %v2513_v20 = vpop.f32.mrf.mxu2  ;;  %v6728_v32 = vpop.f32.mrf.mxu0  ;;  %v793_v24 = vadd.f32 %v6574_v27, %v612_v19  ;;  %v697_v43 = vadd.f32 %v6549_v14, %v673_v37  ;;  %v1423_v14 = vadd.f32 %v6641_v23, %v6645_v36  ;;  %v1168_v9 = vadd.f32 %v6626_v8, %v1144_v17  ;;  %v7310_v37 = vld [vmem:[#allocation14_spill] sm:$0xff] }
 0x239   : > { %v2490_v22 = vadd.f32 %v2489_v13, %v2463_v28  ;;  %v1046_v36 = vadd.f32 %v6607_v6, %v1022_v59  ;;  %v7305_v13 = vld [vmem:[#allocation17_spill] sm:$0xff]  ;;  %v7317_v59 = vld [vmem:[#allocation12_spill] sm:$0xff] }
 0x23a   : > { %v819_v11 = vadd.f32 %v6569_v49, %v793_v24  ;;  %v721_v4 = vadd.f32 %v6542_v34, %v697_v43  ;;  %v1727_v49 = vadd.f32 %v6665_v63, %v6669_v1  ;;  %v1447_v23 = vadd.f32 %v6647_v31, %v1423_v14  ;;  %v7306_v63 = vld [vmem:[#allocation18_spill] sm:$0xff]  ;;  %v7316_v14 = vld [vmem:[#allocation39_spill] sm:$0xff] }
 0x23b   : > { %v1908_v34 = vadd.f32 %v6681_v12, %v1884_v47  ;;  %v1629_v31 = vadd.f32 %v6657_v57, %v1605_v44  ;;  %v1192_v28 = vadd.f32 %v7305_v13, %v1168_v9  ;;  %v7308_v1 = vld [vmem:[#allocation30_spill] sm:$0xff]  ;;  %v2514_v19 = vadd.f32 %v2513_v20, %v2490_v22  ;;  %v7323_v22 = vld [vmem:[#allocation13_spill] sm:$0xff] }
 0x23c   : > { %v843_v3 = vadd.f32 %v6576_v30, %v819_v11  ;;  %v745_v42 = vadd.f32 %v6551_v62, %v721_v4  ;;  %v1471_v16 = vadd.f32 %v6651_v55, %v1447_v23  ;;  %v1751_v8 = vadd.f32 %v6671_v15, %v1727_v49  ;;  %v7309_v15 = vld [vmem:[#allocation27_spill] sm:$0xff]  ;;  %v7314_v11 = vld [vmem:[#allocation22_spill] sm:$0xff]  ;;  %v7318_v49 = vld [vmem:[#allocation16_spill] sm:$0xff] }
 0x23d   : > { %v2333_v62 = vadd.f32 %v7304_v51, %v7303_v40  ;;  %v2054_v55 = vadd.f32 %v7308_v1, %v2030_v25  ;;  %v1932_v26 = vadd.f32 %v7309_v15, %v1908_v34  ;;  %v1068_v24 = vadd.f32 %v7311_v33, %v1046_v36  ;;  %v7326_v40 = vld [vmem:[#allocation23_spill] sm:$0xff]  ;;  %v7330_v1 = vld [vmem:[#allocation42_spill] sm:$0xff] }
 0x23e   : > { %v867_v30 = vadd.f32 %v6591_v52, %v843_v3  ;;  %v1349_v52 = vadd.f32 %v7306_v63, %v1325_v41  ;;  %v1775_v6 = vadd.f32 %v7307_v35, %v1751_v8  ;;  %v1495_v43 = vadd.f32 %v7312_v38, %v1471_v16  ;;  %v7320_v3 = vld [vmem:[#allocation26_spill] sm:$0xff]  ;;  %v7322_v41 = vld [vmem:[#allocation41_spill] sm:$0xff]  ;;  %v7324_v16 = vld [vmem:[#allocation20_spill] sm:$0xff] }
 0x23f   : > { %v2635_v29 = vpop.f32.mrf.mxu3  ;;  %v6734_v50 = vpop.f32.mrf.mxu1  ;;  %v2078_v5 = vadd.f32 %v7313_v46, %v2054_v55  ;;  %v1653_v21 = vadd.f32 %v7314_v11, %v1629_v31  ;;  %v2357_v4 = vadd.f32 %v7316_v14, %v2333_v62  ;;  %v767_v17 = vadd.f32 %v7317_v59, %v745_v42  ;;  %v7325_v42 = vld [vmem:[#allocation33_spill] sm:$0xff]  ;;  %v7327_v62 = vld [vmem:[#allocation35_spill] sm:$0xff] }
 0x240   : > { %v2609_v54 = vpop.f32.mrf.mxu2  ;;  %v6737_v56 = vpop.f32.mrf.mxu0  ;;  %v891_v39 = vadd.f32 %v7310_v37, %v867_v30  ;;  %v1214_v20 = vadd.f32 %v7318_v49, %v1192_v28  ;;  %v1799_v44 = vadd.f32 %v7320_v3, %v1775_v6  ;;  %v1956_v9 = vadd.f32 %v7321_v58, %v1932_v26  ;;  %v7329_v35 = vld [vmem:[#allocation29_spill] sm:$0xff] }
 0x241   : > { %v2636_v57 = vadd.f32 %v2635_v29, %v2609_v54  ;;  %v7319_v29 = vld [vmem:[#allocation19_spill] sm:$0xff]  ;;  %v2381_v23 = vadd.f32 %v7322_v41, %v2357_v4  ;;  %v2538_v25 = vadd.f32 %v6726_v48, %v2514_v19  ;;  %v1216_v36 = vadd.f32 %v1068_v24, %v767_v17  ;;  %v7332_v24 = vld [vmem:[#allocation37_spill] sm:$0xff] }
 0x242   : > { %v1371_v54 = vadd.f32 %v7319_v29, %v1349_v52  ;;  %v913_v30 = vadd.f32 %v7323_v22, %v891_v39  ;;  %v1517_v8 = vadd.f32 %v7324_v16, %v1495_v43  ;;  %v1675_v51 = vadd.f32 %v7326_v40, %v1653_v21 }
 0x243   : > { %v2660_v34 = vadd.f32 %v6737_v56, %v2636_v57  ;;  %v7328_v56 = vld [vmem:[#allocation24_spill] sm:$0xff]  ;;  %v1978_v6 = vadd.f32 %v7329_v35, %v1956_v9  ;;  %v2405_v55 = vadd.f32 %v7330_v1, %v2381_v23  ;;  %v2562_v15 = vadd.f32 %v6728_v32, %v2538_v25  ;;  %v7331_v57 = vld [vmem:[#allocation31_spill] sm:$0xff] }
 0x244   : > { %v1217_v48 = vadd.f32 %v1214_v20, %v913_v30  ;;  %v1519_v63 = vadd.f32 %v1371_v54, %v1216_v36  ;;  %v1821_v52 = vadd.f32 %v7328_v56, %v1799_v44  ;;  %v6106_v41 = vmov 256.0  }
 0x245   : > { %v2584_v21 = vadd.f32 %v6734_v50, %v2562_v15  ;;  %6032 = vrcp.f32 %v6106_v41 }
 0x246   : > { %v1520_v19 = vadd.f32 %v1517_v8, %v1217_v48  ;;  %v1823_v33 = vadd.f32 %v1675_v51, %v1519_v63 }
 0x247   : > { %v6747_v61 = vpop.f32.mrf.mxu3  ;;  %v6752_v45 = vpop.f32.mrf.mxu1 }
 0x248   : > { %v6757_v27 = vpop.f32.mrf.mxu2  ;;  %v2766_v53 = vpop.f32.mrf.mxu0  ;;  %v1824_v43 = vadd.f32 %v1821_v52, %v1520_v19  ;;  %v2126_v46 = vadd.f32 %v1978_v6, %v1823_v33 }
 0x24f   : > { %v2840_v18 = vpop.f32.mrf.mxu3  ;;  %v2792_v10 = vpop.f32.mrf.mxu1 }
 0x250   : > { %v2793_v7 = vadd.f32 %v2792_v10, %v2766_v53  ;;  %v2816_v12 = vpop.f32.mrf.mxu2  ;;  %v2864_v0 = vpop.f32.mrf.mxu0  ;;  %v7315_v53 = vld [vmem:[#allocation34_spill] sm:$0xff]  ;;  %v2102_v10 = vadd.f32 %v7325_v42, %v2078_v5  ;;  %v7333_v5 = vld [vmem:[#allocation40_spill] sm:$0xff] }
 0x251   : > { %v2235_v2 = vadd.f32 %v7315_v53, %v2211_v60  ;;  %v2427_v11 = vadd.f32 %v7333_v5, %v2405_v55 }
 0x252   : > { %v2817_v47 = vadd.f32 %v2816_v12, %v2793_v7  ;;  %v2684_v12 = vadd.f32 %v6752_v45, %v2660_v34  ;;  %v2124_v37 = vadd.f32 %v7331_v57, %v2102_v10 }
 0x253   : > { %v2259_v7 = vadd.f32 %v7327_v62, %v2235_v2 }
 0x254   : > { %v2841_v13 = vadd.f32 %v2840_v18, %v2817_v47  ;;  %v2708_v18 = vadd.f32 %v6757_v27, %v2684_v12  ;;  %v2127_v2 = vadd.f32 %v2124_v37, %v1824_v43  ;;  %v214_v37 = vld [vmem:[%s7244_s2 + $0x4] sm:$0xf] }
 0x255   : > { %v2281_v45 = vadd.f32 %v7332_v24, %v2259_v7  ;;  %v3140_v33 = vsel %vm311_vm0, %v214_v37, 0 }
 0x256   : > { %v2865_v38 = vadd.f32 %v2864_v0, %v2841_v13  ;;  %v2730_v4 = vadd.f32 %v6747_v61, %v2708_v18  ;;  %v2430_v20 = vadd.f32 %v2427_v11, %v2127_v2  ;;  %v6033_v61 = vpop.eup %6032 }
 0x257   : > { %v2886_v31 = vpop.f32.mrf.mxu1  ;;  %v2938_v60 = vpop.f32.mrf.mxu3  ;;  %v2429_v14 = vadd.f32 %v2281_v45, %v2126_v46  ;;  %v3043_v23 = vmul.f32 256.0, %v6033_v61  ;;  %vm3047_vm11 = vweird.f32 %v6033_v61 }
 0x258   : > { %v2912_v28 = vpop.f32.mrf.mxu2  ;;  %v2962_v39 = vpop.f32.mrf.mxu0  ;;  %v2887_v47 = vadd.f32 %v2886_v31, %v2865_v38  ;;  %v2733_v0 = vadd.f32 %v2730_v4, %v2430_v20 }
 0x259   : > { %v2939_v26 = vadd.f32 %v2938_v60, %v2912_v28  ;;  %v2732_v29 = vadd.f32 %v2584_v21, %v2429_v14  ;;  %v3044_v25 = vsub.f32 1.0, %v3043_v23 }
 0x25b   : > { %v2963_v53 = vadd.f32 %v2962_v39, %v2939_v26  ;;  %v3035_v54 = vadd.f32 %v2887_v47, %v2732_v29  ;;  %v3045_v34 = vmul.f32 %v6033_v61, %v3044_v25 }
 0x25d   : > { %v3037_v58 = vsel %vm315_vm3, %v3035_v54, 0.0  ;;  %v3046_v22 = vadd.f32 %v6033_v61, %v3045_v34 }
 0x25f   : > { %v2986_v32 = vpop.f32.mrf.mxu1  ;;  %v3032_v49 = vpop.f32.mrf.mxu3  ;;  %v6822_v30 = vsel %vm3047_vm11, %v6033_v61, %v3046_v22 }
 0x260   : > { %v2987_v59 = vadd.f32 %v2986_v32, %v2963_v53  ;;  %v3010_v17 = vpop.f32.mrf.mxu2  ;;  %v3165_v53 = vand.u32 4294901760, %v3140_v33 }
 0x262   : > { %v3011_v27 = vadd.f32 %v3010_v17, %v2987_v59  ;;  %v3166_v2 = vsub.f32 %v3140_v33, %v3165_v53 }
 0x264   : > { %v3033_v3 = vadd.f32 %v3032_v49, %v3011_v27  ;;  %v3167_v27 = vand.u32 4294901760, %v3166_v2 }
 0x266   : > { %v3036_v44 = vadd.f32 %v3033_v3, %v2733_v0  ;;  %v3168_v3 = vsub.f32 %v3166_v2, %v3167_v27 }
 0x268   : > { %v3038_v50 = vsel %vm315_vm3, %v3036_v44, 0.0  ;;  %v3169_v25 = vand.u32 4294901760, %v3168_v3 }
 0x269   : > { %v3039_v9 = vadd.f32 %v3038_v50, %v3037_v58 }
 0x26b   : > { %3040 = vadd.xlane.f32.xlu1 %v3039_v9 }
 0x2de   : > { %v3041_v36 = vpop.xlane.xlu1 %3040 }
 0x2df   : > { %v3049_v16 = vmul.f32 %v6822_v30, %v3041_v36 }
 0x2e1   : > { %v3050_v8 = vsub.f32 %v3035_v54, %v3049_v16  ;;  %v3051_v42 = vsub.f32 %v3036_v44, %v3049_v16 }
 0x2e3   : > { %v3052_v10 = vmul.f32 %v3050_v8, %v3050_v8  ;;  %v3053_v31 = vmul.f32 %v3051_v42, %v3051_v42 }
 0x2e5   : > { %v3054_v60 = vsel %vm315_vm3, %v3052_v10, 0.0  ;;  %v3055_v40 = vsel %vm315_vm3, %v3053_v31, 0.0  ;;  %v213_v10 = vld [vmem:[%s7244_s2] sm:$0xf] }
 0x2e6   : > { %v3056_v51 = vadd.f32 %v3055_v40, %v3054_v60  ;;  %v3441_v31 = vsel %vm311_vm0, %v213_v10, 0 }
 0x2e7   : > { %v6918_v60 = vand.u32 4294901760, %v3441_v31 }
 0x2e8   : > { %3057 = vadd.xlane.f32.xlu2 %v3056_v51 }
 0x35b   : > { %v3058_v62 = vpop.xlane.xlu2 %3057 }
 0x35c   : > { %v3059_v7 = vmul.f32 %v3058_v62, %v6822_v30  ;;  %v6921_v62 = vsub.f32 %v3441_v31, %v6918_v60 }
 0x35e   : > { %v3060_v12 = vadd.f32 1e-05, %v3059_v7 }
 0x360   : > { %6034 = vrsqrt.f32 %v3060_v12  ;;  %vm3067_vm13 = vweird.f32 %v3060_v12 }
 0x366   : > { %v6035_v13 = vpop.eup %6034 }
 0x367   : > { %v3062_v28 = vmul.f32 %v6035_v13, %v3060_v12  ;;  %vm3068_vm12 = vweird.f32 %v6035_v13 }
 0x368   : > { %vm3069_vm14 = vmor %vm3067_vm13, %vm3068_vm12 }
 0x369   : > { %v3063_v48 = vmul.f32 %v6035_v13, %v3062_v28 }
 0x36b   : > { %v3064_v63 = vmul.f32 0.5, %v3063_v48 }
 0x36d   : > { %v3065_v56 = vsub.f32 1.5, %v3064_v63 }
 0x36f   : > { %v3066_v52 = vmul.f32 %v6035_v13, %v3065_v56 }
 0x371   : > { %v3070_v35 = vsel %vm3069_vm14, %v6035_v13, %v3066_v52  ;;  %v6926_v13 = vand.u32 4294901760, %v6921_v62 }
 0x372   : > { %v3071_v6 = vmul.f32 %v3070_v35, %v3050_v8  ;;  %v3072_v1 = vmul.f32 %v3070_v35, %v3051_v42 }
 0x373   : > { %v3469_v28 = vsub.f32 %v6921_v62, %v6926_v13 }
 0x374   : > { %v6828_v55 = vmax.f32 %v3071_v6, 0.0  ;;  %v6830_v15 = vmax.f32 %v3072_v1, 0.0 }
 0x375   : > { %v3470_v37 = vand.u32 4294901760, %v3469_v28 }
 0x376   : > { %3109 = vrot.lane.b32.xlu2 %v6830_v15, %s6104_s4  ;;  %3113 = vrot.lane.b32.xlu1 %v6828_v55, %s6105_s5 }
 0x377   : > { %3075 = vrot.lane.b32.xlu0 %v6828_v55, %s6102_s29 }
 0x37f   : > { %3077 = vrot.lane.b32.xlu0 %v6830_v15, %s6102_s29  ;;  %s5987_s29 = sshll.u32 %s6148_s16, 3  ;;  %s5899_s16 = scalar_lea.sflag [#allocation3], %s161_s10 }
 0x387   : > { %3081 = vrot.lane.b32.xlu0 %v6828_v55, %s6103_s30 }
 0x38f   : > { %3083 = vrot.lane.b32.xlu0 %v6830_v15, %s6103_s30 }
 0x397   : > { %3107 = vrot.lane.b32.xlu0 %v6828_v55, %s6104_s4 }
 0x39f   : > { %3115 = vrot.lane.b32.xlu0 %v6830_v15, %s6105_s5 }
 0x3d0   : > { %v3110_v32 = vpop.permute.xlu2 %3109 }
 0x3e8   : > { %v6894_v44 = vpop.permute.xlu1 %3113 }
 0x3e9   : > { %v3076_v26 = vpop.permute.xlu0 %3075 }
 0x3f1   : > { %v3078_v19 = vpop.permute.xlu0 %3077 }
 0x3f2   : > { %v3079_v45 = vsel %vm233_vm2, %v3076_v26, %v3078_v19  ;;  %v3080_v18 = vsel %vm233_vm2, %v3078_v19, %v3076_v26 }
 0x3f9   : > { %v3082_v57 = vpop.permute.xlu0 %3081 }
 0x401   : > { %v3084_v39 = vpop.permute.xlu0 %3083 }
 0x402   : > { %v3085_v38 = vsel %vm245_vm4, %v3082_v57, %v3084_v39  ;;  %v3086_v43 = vsel %vm245_vm4, %v3084_v39, %v3082_v57 }
 0x403   : > { %v6862_v5 = vsel %vm6221_vm6, %v3086_v43, %v3079_v45  ;;  %v6866_v21 = vsel %vm6217_vm5, %v3085_v38, %v3080_v18  ;;  %v6882_v17 = vsel %vm6255_vm9, %v3080_v18, %v3085_v38  ;;  %v6886_v20 = vsel %vm6249_vm8, %v3079_v45, %v3086_v43  ;;  %v215_v45 = vld [vmem:[%s7244_s2 + $0x8] sm:$0xf] }
 0x404   : > { %3099 = vrot.lane.b32.xlu1 %v6862_v5, %s6105_s5  ;;  %3097 = vrot.lane.b32.xlu2 %v6866_v21, %s6105_s5 }
 0x405   : > { %3091 = vrot.lane.b32.xlu0 %v6866_v21, %s6104_s4 }
 0x409   : > { %v3108_v14 = vpop.permute.xlu0 %3107 }
 0x40a   : > { %v6876_v4 = vsel %vm200_vm1, %v3108_v14, %v3110_v32  ;;  %v3112_v50 = vsel %vm200_vm1, %v3110_v32, %v3108_v14 }
 0x40b   : > { %v3146_v47 = vsel %vm315_vm3, %v6876_v4, 0 }
 0x40c   : > { %v3309_v29 = vand.u32 4294901760, %v3146_v47  ;;  %3129 = vrot.lane.b32.xlu1 %v6882_v17, %s6105_s5  ;;  %3125 = vrot.lane.b32.xlu2 %v6886_v20, %s6104_s4 }
 0x40d   : > { %3093 = vrot.lane.b32.xlu0 %v6862_v5, %s6104_s4 }
 0x40e   : > { %v3336_v0 = vsub.f32 %v3146_v47, %v3309_v29 }
 0x410   : > { %v3337_v54 = vand.u32 4294901760, %v3336_v0 }
 0x411   : > { %v6896_v58 = vpop.permute.xlu0 %3115 }
 0x412   : > { %v6904_v9 = vsel %vm262_vm7, %v6894_v44, %v6896_v58  ;;  %v3338_v41 = vsub.f32 %v3336_v0, %v3337_v54 }
 0x413   : > { %v3119_v61 = vsel %vm200_vm1, %v6904_v9, %v3112_v50 }
 0x414   : > { %v3143_v23 = vsel %vm315_vm3, %v3119_v61, 0  ;;  %v3339_v22 = vand.u32 4294901760, %v3338_v41 }
 0x415   : > { %v3163_v34 = vand.u32 4294901760, %v3143_v23  ;;  %3123 = vrot.lane.b32.xlu0 %v6882_v17, %s6104_s4 }
 0x417   : > { %v3190_v36 = vsub.f32 %v3143_v23, %v3163_v34  ;;  %3164 = vmatpush.msrb.mxu0 %v3163_v34  ;;  %3240 = vmatpush.msrb.mxu3 %v3163_v34 }
 0x418   : > { %3170 = vmatmul.f32.vlgmr.msrb.gmra.mxu0 %v3169_v25  ;;  %3244 = vmatmul.f32.vlgmr.msrb.gmra.mxu3 %v3167_v27 }
 0x419   : > { %3340 = vmatpush.msra.mxu3 %v3339_v22  ;;  %3217 = vmatpush.msrb.mxu2 %v3190_v36  ;;  %v3191_v16 = vand.u32 4294901760, %v3190_v36 }
 0x41a   : > { %3220 = vmatmul.f32.vlgmr.msrb.gmra.mxu2 %v3166_v2 }
 0x41b   : > { %3434 = vmatpush.msrb.mxu3 %v3309_v29  ;;  %3310 = vmatpush.msra.mxu2 %v3309_v29  ;;  %v3192_v8 = vsub.f32 %v3190_v36, %v3191_v16 }
 0x41c   : > { %3266 = vmatpush.msra.mxu0 %v3191_v16 }
 0x41d   : > { %3412 = vmatpush.msrb.mxu2 %v3337_v54  ;;  %3131 = vrot.lane.b32.xlu0 %v6886_v20, %s6105_s5  ;;  %v3193_v42 = vand.u32 4294901760, %v3192_v8  ;;  %s5910_s5 = scalar_lea.hbm %s7245_s3, %s5987_s29 }
 0x41e   : > { %3363 = vmatpush.msrb.mxu0 %v3336_v0  ;;  %s5914_s20 = sshll.u32 %s5910_s5, 4  ;;  %s5915_s20 = int_to_ptr.hbm [resolvable:$true] %s5914_s20 }
 0x41f   : > { %3194 = vmatpush.msrb.mxu1 %v3193_v42  ;;  %s6052_s24 = sshra.s32 %s5915_s20, 4  ;;  %s6053_s24 = int_to_ptr.hbm [resolvable:$true] %s6052_s24 }
 0x420   : > { %3268 = vmatmul.f32.vlgmr.msra.gmra.mxu0 %v3165_v53  ;;  %3196 = vmatmul.f32.vlgmr.msrb.gmra.mxu1 %v3165_v53  ;;  %s6054_s25 = scalar_lea.hbm %s6053_s24, 8  ;;  %p6059_p0 = scmp.lt.s32.totalorder %s6053_s24, %s7245_s3 }
 0x421   : > { %3288 = vmatpush.msra.mxu1 %v3163_v34  ;;  %3342 = vmatmul.f32.vlgmr.msra.gmra.mxu3 %v3165_v53  ;;  %p6055_p11 = scmp.ne.s32.totalorder %s6053_s24, %s6054_s25  ;;  %p6060_p1 = scmp.lt.s32.totalorder %s6058_s28, %s6054_s25 }
 0x422   : > { %3316 = vmatmul.f32.vlgmr.msra.gmra.mxu2 %v3169_v25 }
 0x423   : > { %3386 = vmatpush.msrb.mxu1 %v3309_v29  ;;  %p6056_p12 = pnand %p6055_p11, %p6165_p5  ;;  %p6061_p2 = por %p6060_p1, %p6059_p0 }
 0x425   : > { %p6057_p13 = pneg %p6056_p12 }
 0x427   : > { %p6062_p3 = pnand %p6061_p2, %p6057_p13 }
 0x428   : > { %3366 = vmatmul.f32.vlgmr.msrb.gmra.mxu0 %v3166_v2  ;;  %3290 = vmatmul.f32.vlgmr.msra.gmra.mxu1 %v3165_v53 }
 0x429   : > { %3436 = vmatmul.f32.vlgmr.msrb.gmra.mxu3 %v3165_v53 }
 0x42a   : > { %3414 = vmatmul.f32.vlgmr.msrb.gmra.mxu2 %v3165_v53  ;;  %v3742_v53 = vsel %vm311_vm0, %v215_v45, 0 }
 0x42b   : > { %v6958_v29 = vand.u32 4294901760, %v3742_v53 }
 0x42d   : > { %v6964_v3 = vsub.f32 %v3742_v53, %v6958_v29  ;;  %v217_v53 = vld [vmem:[%s7244_s2 + $0x10] sm:$0xf] }
 0x42f   : > { %v6984_v8 = vand.u32 4294901760, %v6964_v3 }
 0x430   : > { %3390 = vmatmul.f32.vlgmr.msrb.gmra.mxu1 %v3167_v27 }
 0x45e   : > { %v3098_v40 = vpop.permute.xlu2 %3097 }
 0x466   : > { %v3126_v43 = vpop.permute.xlu2 %3125 }
 0x476   : > { %v3100_v51 = vpop.permute.xlu1 %3099 }
 0x477   : > { %v3102_v7 = vsel %vm262_vm7, %v3100_v51, %v3098_v40  ;;  %v3092_v12 = vpop.permute.xlu0 %3091  ;;  %v6932_v63 = vsel %vm262_vm7, %v3098_v40, %v3100_v51  ;;  %v3770_v40 = vsub.f32 %v6964_v3, %v6984_v8 }
 0x479   : > { %v3771_v28 = vand.u32 4294901760, %v3770_v40 }
 0x47e   : > { %v3130_v50 = vpop.permute.xlu1 %3129 }
 0x47f   : > { %v3094_v48 = vpop.permute.xlu0 %3093 }
 0x480   : > { %v3095_v56 = vsel %vm200_vm1, %v3092_v12, %v3094_v48  ;;  %v3096_v52 = vsel %vm200_vm1, %v3094_v48, %v3092_v12  ;;  %v4048_v12 = vsel %vm315_vm3, %v6866_v21, 0 }
 0x481   : > { %v3103_v35 = vsel %vm200_vm1, %v6932_v63, %v3096_v52  ;;  %v6943_v1 = vsel %vm203_vm10, %v3095_v56, %v3102_v7  ;;  %v3447_v26 = vsel %vm315_vm3, %v3095_v56, 0  ;;  %v216_v56 = vld [vmem:[%s7244_s2 + $0xc] sm:$0xf]  ;;  %v4068_v52 = vand.u32 4294901760, %v4048_v12 }
 0x482   : > { %v3444_v19 = vsel %vm315_vm3, %v3103_v35, 0  ;;  %v3610_v57 = vand.u32 4294901760, %v3447_v26  ;;  %v4045_v21 = vsel %vm311_vm0, %v216_v56, 0 }
 0x483   : > { %v3464_v39 = vand.u32 4294901760, %v3444_v19 }
 0x484   : > { %v3637_v33 = vsub.f32 %v3447_v26, %v3610_v57  ;;  %v7005_v26 = vand.u32 4294901760, %v4045_v21 }
 0x485   : > { %v3491_v18 = vsub.f32 %v3444_v19, %v3464_v39  ;;  %3465 = vmatpush.msra.mxu0 %v3464_v39  ;;  %3541 = vmatpush.msra.mxu3 %v3464_v39 }
 0x486   : > { %3471 = vmatmul.f32.vlgmr.msra.gmra.mxu0 %v3470_v37  ;;  %3545 = vmatmul.f32.vlgmr.msra.gmra.mxu3 %v6926_v13  ;;  %v3638_v38 = vand.u32 4294901760, %v3637_v33 }
 0x487   : > { %3518 = vmatpush.msra.mxu2 %v3491_v18  ;;  %v3124_v46 = vpop.permute.xlu0 %3123  ;;  %v3492_v11 = vand.u32 4294901760, %v3491_v18 }
 0x488   : > { %v3127_v2 = vsel %vm200_vm1, %v3124_v46, %v3126_v43  ;;  %3521 = vmatmul.f32.vlgmr.msra.gmra.mxu2 %v6921_v62  ;;  %v3639_v32 = vsub.f32 %v3637_v33, %v3638_v38  ;;  %v3128_v61 = vsel %vm200_vm1, %v3126_v43, %v3124_v46  ;;  %v4351_v46 = vsel %vm315_vm3, %v6828_v55, 0 }
 0x489   : > { %v3748_v14 = vsel %vm315_vm3, %v3127_v2, 0  ;;  %3611 = vmatpush.msrb.mxu2 %v3610_v57  ;;  %3567 = vmatpush.msrb.mxu0 %v3492_v11  ;;  %v3493_v47 = vsub.f32 %v3491_v18, %v3492_v11  ;;  %v4354_v11 = vsel %vm315_vm3, %v6830_v15, 0 }
 0x48a   : > { %v6956_v59 = vand.u32 4294901760, %v3748_v14  ;;  %v3640_v49 = vand.u32 4294901760, %v3639_v32  ;;  %v4517_v32 = vand.u32 4294901760, %v4354_v11 }
 0x48b   : > { %3713 = vmatpush.msra.mxu2 %v3638_v38  ;;  %3664 = vmatpush.msra.mxu0 %v3637_v33  ;;  %v3494_v27 = vand.u32 4294901760, %v3493_v47 }
 0x48c   : > { %v3938_v0 = vsub.f32 %v3748_v14, %v6956_v59  ;;  %3641 = vmatpush.msrb.mxu3 %v3640_v49  ;;  %v4348_v14 = vsel %vm311_vm0, %v217_v53, 0  ;;  %v4544_v47 = vsub.f32 %v4354_v11, %v4517_v32 }
 0x48d   : > { %3495 = vmatpush.msra.mxu1 %v3494_v27  ;;  %v7025_v15 = vand.u32 4294901760, %v4348_v14 }
 0x48e   : > { %3735 = vmatpush.msra.mxu3 %v3610_v57  ;;  %v3939_v54 = vand.u32 4294901760, %v3938_v0  ;;  %3497 = vmatmul.f32.vlgmr.msra.gmra.mxu1 %v6918_v60  ;;  %v4545_v49 = vand.u32 4294901760, %v4544_v47 }
 0x48f   : > { %3569 = vmatmul.f32.vlgmr.msrb.gmra.mxu0 %v6918_v60  ;;  %3589 = vmatpush.msrb.mxu1 %v3464_v39  ;;  %v3132_v41 = vpop.permute.xlu0 %3131 }
 0x490   : > { %3643 = vmatmul.f32.vlgmr.msrb.gmra.mxu3 %v6918_v60  ;;  %v6971_v23 = vsel %vm262_vm7, %v3130_v50, %v3132_v41  ;;  %v3134_v25 = vsel %vm262_vm7, %v3132_v41, %v3130_v50  ;;  %3617 = vmatmul.f32.vlgmr.msrb.gmra.mxu2 %v3470_v37  ;;  %v3940_v16 = vsub.f32 %v3938_v0, %v3939_v54 }
 0x491   : > { %3687 = vmatpush.msra.mxu1 %v3610_v57  ;;  %v3135_v34 = vsel %vm200_vm1, %v6971_v23, %v3128_v61  ;;  %v6980_v22 = vsel %vm203_vm10, %v3127_v2, %v3134_v25  ;;  %v4371_v2 = vand.u32 4294901760, %v4351_v46  ;;  %v4654_v61 = vsel %vm315_vm3, %v6882_v17, 0 }
 0x492   : > { %v3745_v36 = vsel %vm315_vm3, %v3135_v34, 0  ;;  %v3941_v31 = vand.u32 4294901760, %v3940_v16  ;;  %v4657_v34 = vsel %vm315_vm3, %v6886_v20, 0  ;;  %v4674_v16 = vand.u32 4294901760, %v4654_v61 }
 0x493   : > { %v3765_v42 = vand.u32 4294901760, %v3745_v36  ;;  %v4398_v55 = vsub.f32 %v4351_v46, %v4371_v2 }
 0x494   : > { %v4701_v17 = vsub.f32 %v4654_v61, %v4674_v16 }
 0x495   : > { %v3792_v10 = vsub.f32 %v3745_v36, %v3765_v42  ;;  %3766 = vmatpush.msrb.mxu0 %v3765_v42  ;;  %3842 = vmatpush.msrb.mxu3 %v3765_v42  ;;  %v218_v36 = vld [vmem:[%s7244_s2 + $0x14] sm:$0xf] }
 0x496   : > { %3591 = vmatmul.f32.vlgmr.msrb.gmra.mxu1 %v6918_v60 }
 0x497   : > { %3667 = vmatmul.f32.vlgmr.msra.gmra.mxu0 %v6921_v62  ;;  %3819 = vmatpush.msrb.mxu2 %v3792_v10  ;;  %v3793_v51 = vand.u32 4294901760, %v3792_v10  ;;  %v4051_v62 = vsel %vm315_vm3, %v6862_v5, 0  ;;  %v4095_v5 = vsub.f32 %v4048_v12, %v4068_v52 }
 0x498   : > { %3737 = vmatmul.f32.vlgmr.msra.gmra.mxu3 %v6918_v60  ;;  %3715 = vmatmul.f32.vlgmr.msra.gmra.mxu2 %v6918_v60  ;;  %v4214_v35 = vand.u32 4294901760, %v4051_v62 }
 0x499   : > { %3942 = vmatpush.msra.mxu3 %v3941_v31  ;;  %3912 = vmatpush.msra.mxu2 %v6956_v59  ;;  %v3794_v7 = vsub.f32 %v3792_v10, %v3793_v51  ;;  %v4096_v19 = vand.u32 4294901760, %v4095_v5  ;;  %v4702_v31 = vand.u32 4294901760, %v4701_v17 }
 0x49a   : > { %3868 = vmatpush.msra.mxu0 %v3793_v51  ;;  %v4241_v60 = vsub.f32 %v4051_v62, %v4214_v35 }
 0x49b   : > { %v3795_v48 = vand.u32 4294901760, %v3794_v7  ;;  %v4097_v37 = vsub.f32 %v4095_v5, %v4096_v19  ;;  %v4703_v7 = vsub.f32 %v4701_v17, %v4702_v31 }
 0x49c   : > { %v4242_v57 = vand.u32 4294901760, %v4241_v60 }
 0x49d   : > { %3796 = vmatpush.msrb.mxu1 %v3795_v48  ;;  %v4098_v45 = vand.u32 4294901760, %v4097_v37  ;;  %v4704_v62 = vand.u32 4294901760, %v4703_v7  ;;  %v3245_v37 = vpop.f32.mrf.mxu3 }
 0x49e   : > { %3691 = vmatmul.f32.vlgmr.msra.gmra.mxu1 %v6926_v13  ;;  %v4071_v13 = vsub.f32 %v4045_v21, %v7005_v26  ;;  %v4243_v39 = vsub.f32 %v4241_v60, %v4242_v57  ;;  %v4960_v21 = vsel %vm315_vm3, %v6943_v1, 0 }
 0x49f   : > { %3772 = vmatmul.f32.vlgmr.msrb.gmra.mxu0 %v3771_v28  ;;  %3890 = vmatpush.msra.mxu1 %v3765_v42  ;;  %v4651_v42 = vsel %vm311_vm0, %v218_v36, 0 }
 0x4a0   : > { %3846 = vmatmul.f32.vlgmr.msrb.gmra.mxu3 %v6984_v8  ;;  %3965 = vmatpush.msrb.mxu0 %v3938_v0  ;;  %v4072_v33 = vand.u32 4294901760, %v4071_v13  ;;  %v4244_v18 = vand.u32 4294901760, %v4243_v39  ;;  %v4546_v0 = vsub.f32 %v4544_v47, %v4545_v49  ;;  %v7045_v20 = vand.u32 4294901760, %v4651_v42 }
 0x4a1   : > { %4036 = vmatpush.msrb.mxu3 %v6956_v59  ;;  %3822 = vmatmul.f32.vlgmr.msrb.gmra.mxu2 %v6964_v3 }
 0x4a2   : > { %4014 = vmatpush.msrb.mxu2 %v3939_v54  ;;  %v4073_v38 = vsub.f32 %v4071_v13, %v4072_v33  ;;  %v4547_v50 = vand.u32 4294901760, %v4546_v0  ;;  %v4677_v51 = vsub.f32 %v4651_v42, %v7045_v20 }
 0x4a4   : > { %v4074_v43 = vand.u32 4294901760, %v4073_v38  ;;  %v3197_v38 = vpop.f32.mrf.mxu1 }
 0x4a6   : > { %3798 = vmatmul.f32.vlgmr.msrb.gmra.mxu1 %v6958_v29 }
 0x4a7   : > { %3870 = vmatmul.f32.vlgmr.msra.gmra.mxu0 %v6958_v29  ;;  %3988 = vmatpush.msrb.mxu1 %v6956_v59  ;;  %v4399_v59 = vand.u32 4294901760, %v4398_v55 }
 0x4a8   : > { %3944 = vmatmul.f32.vlgmr.msra.gmra.mxu3 %v6958_v29  ;;  %4069 = vmatpush.msra.mxu0 %v4068_v52 }
 0x4a9   : > { %4145 = vmatpush.msra.mxu3 %v4068_v52  ;;  %3918 = vmatmul.f32.vlgmr.msra.gmra.mxu2 %v3771_v28  ;;  %v4400_v27 = vsub.f32 %v4398_v55, %v4399_v59  ;;  %v7051_v28 = vand.u32 4294901760, %v4677_v51 }
 0x4aa   : > { %4122 = vmatpush.msra.mxu2 %v4095_v5  ;;  %v219_v5 = vld [vmem:[%s7244_s2 + $0x18] sm:$0xf] }
 0x4ab   : > { %v4679_v56 = vsub.f32 %v4677_v51, %v7051_v28 }
 0x4ac   : > { %v3291_v24 = vpop.f32.mrf.mxu1 }
 0x4ae   : > { %3892 = vmatmul.f32.vlgmr.msra.gmra.mxu1 %v6958_v29 }
 0x4af   : > { %3968 = vmatmul.f32.vlgmr.msrb.gmra.mxu0 %v6964_v3  ;;  %4099 = vmatpush.msra.mxu1 %v4098_v45  ;;  %v4401_v3 = vand.u32 4294901760, %v4400_v27 }
 0x4b0   : > { %4038 = vmatmul.f32.vlgmr.msrb.gmra.mxu3 %v6958_v29  ;;  %4171 = vmatpush.msrb.mxu0 %v4096_v19  ;;  %v3171_v19 = vpop.f32.mrf.mxu0 }
 0x4b1   : > { %4245 = vmatpush.msrb.mxu3 %v4244_v18  ;;  %4016 = vmatmul.f32.vlgmr.msrb.gmra.mxu2 %v6958_v29  ;;  %v4374_v29 = vsub.f32 %v4348_v14, %v7025_v15  ;;  %v3343_v14 = vpop.f32.mrf.mxu3 }
 0x4b2   : > { %4215 = vmatpush.msrb.mxu2 %v4214_v35 }
 0x4b3   : > { %v4375_v54 = vand.u32 4294901760, %v4374_v29 }
 0x4b5   : > { %v4376_v41 = vsub.f32 %v4374_v29, %v4375_v54 }
 0x4b6   : > { %3992 = vmatmul.f32.vlgmr.msrb.gmra.mxu1 %v6984_v8  ;;  %v7041_v8 = vand.u32 4294901760, %v4657_v34 }
 0x4b7   : > { %4075 = vmatmul.f32.vlgmr.msra.gmra.mxu0 %v4074_v43  ;;  %4193 = vmatpush.msrb.mxu1 %v4068_v52  ;;  %v4377_v25 = vand.u32 4294901760, %v4376_v41  ;;  %v4957_v52 = vsel %vm315_vm3, %v6932_v63, 0  ;;  %v4954_v63 = vsel %vm311_vm0, %v219_v5, 0 }
 0x4b8   : > { %4149 = vmatmul.f32.vlgmr.msra.gmra.mxu3 %v4072_v33  ;;  %4268 = vmatpush.msra.mxu0 %v4241_v60  ;;  %v4847_v10 = vsub.f32 %v4657_v34, %v7041_v8  ;;  %v4977_v60 = vand.u32 4294901760, %v4957_v52 }
 0x4b9   : > { %4339 = vmatpush.msra.mxu3 %v4214_v35  ;;  %4125 = vmatmul.f32.vlgmr.msra.gmra.mxu2 %v4071_v13 }
 0x4ba   : > { %4317 = vmatpush.msra.mxu2 %v4242_v57  ;;  %v4848_v40 = vand.u32 4294901760, %v4847_v10  ;;  %v5004_v57 = vsub.f32 %v4957_v52, %v4977_v60 }
 0x4bc   : > { %v4849_v12 = vsub.f32 %v4847_v10, %v4848_v40  ;;  %v5005_v39 = vand.u32 4294901760, %v5004_v57 }
 0x4be   : > { %4101 = vmatmul.f32.vlgmr.msra.gmra.mxu1 %v7005_v26  ;;  %v4850_v48 = vand.u32 4294901760, %v4849_v12  ;;  %v5006_v46 = vsub.f32 %v5004_v57, %v5005_v39 }
 0x4bf   : > { %4173 = vmatmul.f32.vlgmr.msrb.gmra.mxu0 %v7005_v26  ;;  %4291 = vmatpush.msra.mxu1 %v4214_v35  ;;  %v4680_v35 = vand.u32 4294901760, %v4679_v56 }
 0x4c0   : > { %4247 = vmatmul.f32.vlgmr.msrb.gmra.mxu3 %v7005_v26  ;;  %4372 = vmatpush.msrb.mxu0 %v4371_v2 }
 0x4c1   : > { %4448 = vmatpush.msrb.mxu3 %v4371_v2  ;;  %4221 = vmatmul.f32.vlgmr.msrb.gmra.mxu2 %v4074_v43  ;;  %v3269_v43 = vpop.f32.mrf.mxu0 }
 0x4c2   : > { %4425 = vmatpush.msrb.mxu2 %v4398_v55 }
 0x4c6   : > { %4195 = vmatmul.f32.vlgmr.msrb.gmra.mxu1 %v7005_v26 }
 0x4c7   : > { %4271 = vmatmul.f32.vlgmr.msra.gmra.mxu0 %v4071_v13  ;;  %4402 = vmatpush.msrb.mxu1 %v4401_v3  ;;  %v7071_v13 = vand.u32 4294901760, %v4954_v63 }
 0x4c8   : > { %4341 = vmatmul.f32.vlgmr.msra.gmra.mxu3 %v7005_v26  ;;  %4474 = vmatpush.msra.mxu0 %v4399_v59 }
 0x4c9   : > { %4548 = vmatpush.msra.mxu3 %v4547_v50  ;;  %4319 = vmatmul.f32.vlgmr.msra.gmra.mxu2 %v7005_v26  ;;  %v7065_v26 = vand.u32 4294901760, %v4960_v21  ;;  %v7076_v18 = vsub.f32 %v4954_v63, %v7071_v13 }
 0x4ca   : > { %4518 = vmatpush.msra.mxu2 %v4517_v32 }
 0x4cb   : > { %v5150_v1 = vsub.f32 %v4960_v21, %v7065_v26  ;;  %v7081_v53 = vand.u32 4294901760, %v7076_v18 }
 0x4cd   : > { %v5151_v45 = vand.u32 4294901760, %v5150_v1 }
 0x4ce   : > { %4295 = vmatmul.f32.vlgmr.msra.gmra.mxu1 %v4072_v33  ;;  %v3221_v33 = vpop.f32.mrf.mxu2 }
 0x4cf   : > { %4378 = vmatmul.f32.vlgmr.msrb.gmra.mxu0 %v4377_v25  ;;  %4496 = vmatpush.msra.mxu1 %v4371_v2  ;;  %v5152_v11 = vsub.f32 %v5150_v1, %v5151_v45  ;;  %v3118_v2 = vsel %vm262_vm7, %v6896_v58, %v6894_v44  ;;  %v5260_v44 = vsel %vm315_vm3, %v6904_v9, 0  ;;  %v3367_v58 = vpop.f32.mrf.mxu0  ;;  %v3437_v9 = vpop.f32.mrf.mxu3 }
 0x4d0   : > { %4452 = vmatmul.f32.vlgmr.msrb.gmra.mxu3 %v4375_v54  ;;  %4571 = vmatpush.msrb.mxu0 %v4544_v47  ;;  %v4982_v47 = vsub.f32 %v7076_v18, %v7081_v53  ;;  %v3122_v59 = vsel %vm203_vm10, %v6876_v4, %v3118_v2  ;;  %v220_v4 = vld [vmem:[%s7244_s2 + $0x1c] sm:$0xf]  ;;  %v7102_v6 = vand.u32 4294901760, %v5260_v44 }
 0x4d1   : > { %4642 = vmatpush.msrb.mxu3 %v4517_v32  ;;  %4428 = vmatmul.f32.vlgmr.msrb.gmra.mxu2 %v4374_v29  ;;  %v5153_v55 = vand.u32 4294901760, %v5152_v11  ;;  %v5263_v27 = vsel %vm315_vm3, %v3122_v59, 0  ;;  %v5257_v3 = vsel %vm311_vm0, %v220_v4, 0 }
 0x4d2   : > { %4620 = vmatpush.msrb.mxu2 %v4545_v49  ;;  %v3198_v49 = vadd.f32 %v3197_v38, %v3171_v19  ;;  %v5307_v41 = vsub.f32 %v5260_v44, %v7102_v6  ;;  %v7115_v36 = vand.u32 4294901760, %v5257_v3 }
 0x4d4   : > { %v3222_v0 = vadd.f32 %v3221_v33, %v3198_v49 }
 0x4d6   : > { %4404 = vmatmul.f32.vlgmr.msrb.gmra.mxu1 %v7025_v15  ;;  %v3246_v50 = vadd.f32 %v3245_v37, %v3222_v0 }
 0x4d7   : > { %4476 = vmatmul.f32.vlgmr.msra.gmra.mxu0 %v7025_v15  ;;  %4594 = vmatpush.msrb.mxu1 %v4517_v32  ;;  %v5007_v32 = vand.u32 4294901760, %v5006_v46 }
 0x4d8   : > { %4550 = vmatmul.f32.vlgmr.msra.gmra.mxu3 %v7025_v15  ;;  %4675 = vmatpush.msra.mxu0 %v4674_v16 }
 0x4d9   : > { %4751 = vmatpush.msra.mxu3 %v4674_v16  ;;  %4524 = vmatmul.f32.vlgmr.msra.gmra.mxu2 %v4377_v25 }
 0x4da   : > { %4728 = vmatpush.msra.mxu2 %v4701_v17  ;;  %v5308_v17 = vand.u32 4294901760, %v5307_v41 }
 0x4dc   : > { %v5309_v7 = vsub.f32 %v5307_v41, %v5308_v17 }
 0x4de   : > { %4498 = vmatmul.f32.vlgmr.msra.gmra.mxu1 %v7025_v15  ;;  %v5310_v5 = vand.u32 4294901760, %v5309_v7 }
 0x4df   : > { %4574 = vmatmul.f32.vlgmr.msrb.gmra.mxu0 %v4374_v29  ;;  %4705 = vmatpush.msra.mxu1 %v4704_v62  ;;  %v4983_v29 = vand.u32 4294901760, %v4982_v47 }
 0x4e0   : > { %4644 = vmatmul.f32.vlgmr.msrb.gmra.mxu3 %v7025_v15  ;;  %4777 = vmatpush.msrb.mxu0 %v4702_v31  ;;  %v7121_v31 = vsub.f32 %v5257_v3, %v7115_v36 }
 0x4e1   : > { %4851 = vmatpush.msrb.mxu3 %v4850_v48  ;;  %4622 = vmatmul.f32.vlgmr.msrb.gmra.mxu2 %v7025_v15  ;;  %v3317_v15 = vpop.f32.mrf.mxu2 }
 0x4e2   : > { %4821 = vmatpush.msrb.mxu2 %v7041_v8  ;;  %v3344_v34 = vadd.f32 %v3343_v14, %v3317_v15  ;;  %v7129_v48 = vand.u32 4294901760, %v7121_v31 }
 0x4e4   : > { %v5285_v63 = vsub.f32 %v7121_v31, %v7129_v48 }
 0x4e6   : > { %4598 = vmatmul.f32.vlgmr.msrb.gmra.mxu1 %v4375_v54  ;;  %v7104_v54 = vand.u32 4294901760, %v5263_v27 }
 0x4e7   : > { %4681 = vmatmul.f32.vlgmr.msra.gmra.mxu0 %v4680_v35  ;;  %4799 = vmatpush.msrb.mxu1 %v4674_v16  ;;  %v3391_v16 = vpop.f32.mrf.mxu1 }
 0x4e8   : > { %4755 = vmatmul.f32.vlgmr.msra.gmra.mxu3 %v7051_v28  ;;  %4874 = vmatpush.msra.mxu0 %v4847_v10  ;;  %v7113_v25 = vsub.f32 %v5263_v27, %v7104_v54  ;;  %v3368_v10 = vadd.f32 %v3367_v58, %v3344_v34 }
 0x4e9   : > { %4945 = vmatpush.msra.mxu3 %v7041_v8  ;;  %4731 = vmatmul.f32.vlgmr.msra.gmra.mxu2 %v4677_v51  ;;  %v3415_v61 = vpop.f32.mrf.mxu2 }
 0x4ea   : > { %4923 = vmatpush.msra.mxu2 %v4848_v40  ;;  %v3392_v12 = vadd.f32 %v3391_v16, %v3368_v10 }
 0x4ee   : > { %4707 = vmatmul.f32.vlgmr.msra.gmra.mxu1 %v7045_v20 }
 0x4ef   : > { %4779 = vmatmul.f32.vlgmr.msrb.gmra.mxu0 %v7045_v20  ;;  %4897 = vmatpush.msra.mxu1 %v7041_v8  ;;  %v3270_v8 = vadd.f32 %v3269_v43, %v3246_v50 }
 0x4f0   : > { %4853 = vmatmul.f32.vlgmr.msrb.gmra.mxu3 %v7045_v20  ;;  %4978 = vmatpush.msrb.mxu0 %v4977_v60 }
 0x4f1   : > { %5054 = vmatpush.msrb.mxu3 %v4977_v60  ;;  %4827 = vmatmul.f32.vlgmr.msrb.gmra.mxu2 %v4680_v35  ;;  %v3292_v40 = vadd.f32 %v3291_v24, %v3270_v8 }
 0x4f2   : > { %5031 = vmatpush.msrb.mxu2 %v5004_v57 }
 0x4f6   : > { %4801 = vmatmul.f32.vlgmr.msrb.gmra.mxu1 %v7045_v20 }
 0x4f7   : > { %4877 = vmatmul.f32.vlgmr.msra.gmra.mxu0 %v4677_v51  ;;  %5008 = vmatpush.msrb.mxu1 %v5007_v32 }
 0x4f8   : > { %4947 = vmatmul.f32.vlgmr.msra.gmra.mxu3 %v7045_v20  ;;  %5080 = vmatpush.msra.mxu0 %v5005_v39 }
 0x4f9   : > { %5154 = vmatpush.msra.mxu3 %v5153_v55  ;;  %4925 = vmatmul.f32.vlgmr.msra.gmra.mxu2 %v7045_v20  ;;  %v5454_v20 = vand.u32 4294901760, %v7113_v25 }
 0x4fa   : > { %5124 = vmatpush.msra.mxu2 %v7065_v26 }
 0x4fb   : > { %v5455_v62 = vsub.f32 %v7113_v25, %v5454_v20 }
 0x4fd   : > { %v5456_v19 = vand.u32 4294901760, %v5455_v62 }
 0x4fe   : > { %4901 = vmatmul.f32.vlgmr.msra.gmra.mxu1 %v7051_v28 }
 0x4ff   : > { %4984 = vmatmul.f32.vlgmr.msrb.gmra.mxu0 %v4983_v29  ;;  %5102 = vmatpush.msra.mxu1 %v4977_v60  ;;  %v3416_v60 = vadd.f32 %v3415_v61, %v3392_v12 }
 0x500   : > { %5058 = vmatmul.f32.vlgmr.msrb.gmra.mxu3 %v7081_v53  ;;  %5177 = vmatpush.msrb.mxu0 %v5150_v1  ;;  %v5563_v1 = vsel %vm315_vm3, %v6971_v23, 0 }
 0x501   : > { %5248 = vmatpush.msrb.mxu3 %v7065_v26  ;;  %5034 = vmatmul.f32.vlgmr.msrb.gmra.mxu2 %v7076_v18  ;;  %v3438_v37 = vadd.f32 %v3437_v9, %v3416_v60  ;;  %v7147_v23 = vand.u32 4294901760, %v5563_v1 }
 0x502   : > { %5226 = vmatpush.msrb.mxu2 %v5151_v45  ;;  %v5286_v45 = vand.u32 4294901760, %v5285_v63 }
 0x503   : > { %v3472_v42 = vpop.f32.mrf.mxu0  ;;  %v5610_v47 = vsub.f32 %v5563_v1, %v7147_v23 }
 0x504   : > { %v3473_v28 = vadd.f32 %v3472_v42, %v3292_v40 }
 0x506   : > { %5010 = vmatmul.f32.vlgmr.msrb.gmra.mxu1 %v7071_v13 }
 0x507   : > { %5082 = vmatmul.f32.vlgmr.msra.gmra.mxu0 %v7071_v13  ;;  %5200 = vmatpush.msrb.mxu1 %v7065_v26 }
 0x508   : > { %5156 = vmatmul.f32.vlgmr.msra.gmra.mxu3 %v7071_v13  ;;  %5281 = vmatpush.msra.mxu0 %v7102_v6 }
 0x509   : > { %5357 = vmatpush.msra.mxu3 %v7102_v6  ;;  %5130 = vmatmul.f32.vlgmr.msra.gmra.mxu2 %v4983_v29  ;;  %v3546_v51 = vpop.f32.mrf.mxu3  ;;  %v5611_v29 = vand.u32 4294901760, %v5610_v47 }
 0x50a   : > { %5334 = vmatpush.msra.mxu2 %v5307_v41 }
 0x50b   : > { %v3498_v56 = vpop.f32.mrf.mxu1  ;;  %v3522_v52 = vpop.f32.mrf.mxu2  ;;  %v5612_v9 = vsub.f32 %v5610_v47, %v5611_v29 }
 0x50c   : > { %v3499_v35 = vadd.f32 %v3498_v56, %v3473_v28  ;;  %v3570_v21 = vpop.f32.mrf.mxu0 }
 0x50d   : > { %v5613_v8 = vand.u32 4294901760, %v5612_v9 }
 0x50e   : > { %v3523_v26 = vadd.f32 %v3522_v52, %v3499_v35  ;;  %5104 = vmatmul.f32.vlgmr.msra.gmra.mxu1 %v7071_v13 }
 0x50f   : > { %5180 = vmatmul.f32.vlgmr.msrb.gmra.mxu0 %v7076_v18  ;;  %5311 = vmatpush.msra.mxu1 %v5310_v5  ;;  %v5566_v18 = vsel %vm315_vm3, %v6980_v22, 0 }
 0x510   : > { %5250 = vmatmul.f32.vlgmr.msrb.gmra.mxu3 %v7071_v13  ;;  %v3547_v57 = vadd.f32 %v3546_v51, %v3523_v26  ;;  %5383 = vmatpush.msrb.mxu0 %v5308_v17  ;;  %v7149_v32 = vand.u32 4294901760, %v5566_v18 }
 0x511   : > { %5457 = vmatpush.msrb.mxu3 %v5456_v19  ;;  %5228 = vmatmul.f32.vlgmr.msrb.gmra.mxu2 %v7071_v13  ;;  %v221_v13 = vld [vmem:[%s7244_s2 + $0x20] sm:$0xf] }
 0x512   : > { %v3571_v39 = vadd.f32 %v3570_v21, %v3547_v57  ;;  %5427 = vmatpush.msrb.mxu2 %v7104_v54  ;;  %v5560_v22 = vsel %vm311_vm0, %v221_v13, 0  ;;  %v5756_v15 = vsub.f32 %v5566_v18, %v7149_v32 }
 0x513   : > { %v3644_v33 = vpop.f32.mrf.mxu3  ;;  %v3592_v38 = vpop.f32.mrf.mxu1  ;;  %v7160_v59 = vand.u32 4294901760, %v5560_v22 }
 0x514   : > { %v3618_v43 = vpop.f32.mrf.mxu2  ;;  %v7142_v46 = vadd.f32 %v3592_v38, %v3571_v39  ;;  %v3668_v2 = vpop.f32.mrf.mxu0  ;;  %v5757_v0 = vand.u32 4294901760, %v5756_v15 }
 0x515   : > { %v3619_v11 = vadd.f32 %v3618_v43, %v3438_v37  ;;  %v7165_v4 = vsub.f32 %v5560_v22, %v7160_v59 }
 0x516   : > { %5204 = vmatmul.f32.vlgmr.msrb.gmra.mxu1 %v7081_v53  ;;  %v5758_v3 = vsub.f32 %v5756_v15, %v5757_v0 }
 0x517   : > { %v3645_v14 = vadd.f32 %v3644_v33, %v3619_v11  ;;  %5287 = vmatmul.f32.vlgmr.msra.gmra.mxu0 %v5286_v45  ;;  %5405 = vmatpush.msrb.mxu1 %v7102_v6  ;;  %v7172_v41 = vand.u32 4294901760, %v7165_v4 }
 0x518   : > { %5361 = vmatmul.f32.vlgmr.msra.gmra.mxu3 %v7129_v48  ;;  %5480 = vmatpush.msra.mxu0 %v7113_v25 }
 0x519   : > { %5551 = vmatpush.msra.mxu3 %v7104_v54  ;;  %v3669_v55 = vadd.f32 %v3668_v2, %v3645_v14  ;;  %5337 = vmatmul.f32.vlgmr.msra.gmra.mxu2 %v7121_v31  ;;  %v5588_v17 = vsub.f32 %v7165_v4, %v7172_v41 }
 0x51a   : > { %5529 = vmatpush.msra.mxu2 %v5454_v20 }
 0x51b   : > { %v3738_v53 = vpop.f32.mrf.mxu3  ;;  %v3692_v49 = vpop.f32.mrf.mxu1  ;;  %v5589_v40 = vand.u32 4294901760, %v5588_v17 }
 0x51c   : > { %v3716_v24 = vpop.f32.mrf.mxu2  ;;  %v3693_v44 = vadd.f32 %v3692_v49, %v3669_v55  ;;  %v3773_v58 = vpop.f32.mrf.mxu0 }
 0x51e   : > { %v3717_v27 = vadd.f32 %v3716_v24, %v3693_v44  ;;  %5313 = vmatmul.f32.vlgmr.msra.gmra.mxu1 %v7115_v36 }
 0x51f   : > { %5385 = vmatmul.f32.vlgmr.msrb.gmra.mxu0 %v7115_v36  ;;  %5503 = vmatpush.msra.mxu1 %v7104_v54  ;;  %v5759_v54 = vand.u32 4294901760, %v5758_v3 }
 0x520   : > { %5459 = vmatmul.f32.vlgmr.msrb.gmra.mxu3 %v7115_v36  ;;  %5584 = vmatpush.msrb.mxu0 %v7147_v23  ;;  %v3739_v6 = vadd.f32 %v3738_v53, %v3717_v27 }
 0x521   : > { %5660 = vmatpush.msrb.mxu3 %v7147_v23  ;;  %5433 = vmatmul.f32.vlgmr.msrb.gmra.mxu2 %v5286_v45 }
 0x522   : > { %5637 = vmatpush.msrb.mxu2 %v5610_v47 }
 0x523   : > { %v3847_v50 = vpop.f32.mrf.mxu3  ;;  %v3799_v61 = vpop.f32.mrf.mxu1 }
 0x524   : > { %v3800_v25 = vadd.f32 %v3799_v61, %v3773_v58  ;;  %v3823_v34 = vpop.f32.mrf.mxu2  ;;  %v3871_v16 = vpop.f32.mrf.mxu0 }
 0x526   : > { %v3824_v42 = vadd.f32 %v3823_v34, %v3800_v25  ;;  %5407 = vmatmul.f32.vlgmr.msrb.gmra.mxu1 %v7115_v36 }
 0x527   : > { %5483 = vmatmul.f32.vlgmr.msra.gmra.mxu0 %v7121_v31  ;;  %5614 = vmatpush.msrb.mxu1 %v5613_v8 }
 0x528   : > { %5553 = vmatmul.f32.vlgmr.msra.gmra.mxu3 %v7115_v36  ;;  %5686 = vmatpush.msra.mxu0 %v5611_v29  ;;  %v3848_v10 = vadd.f32 %v3847_v50, %v3824_v42 }
 0x529   : > { %5760 = vmatpush.msra.mxu3 %v5759_v54  ;;  %5531 = vmatmul.f32.vlgmr.msra.gmra.mxu2 %v7115_v36 }
 0x52a   : > { %5730 = vmatpush.msra.mxu2 %v7149_v32  ;;  %v3872_v20 = vadd.f32 %v3871_v16, %v3848_v10 }
 0x52b   : > { %v3945_v51 = vpop.f32.mrf.mxu3  ;;  %v3893_v7 = vpop.f32.mrf.mxu1 }
 0x52c   : > { %v3894_v12 = vadd.f32 %v3893_v7, %v3872_v20  ;;  %v3919_v31 = vpop.f32.mrf.mxu2  ;;  %v3969_v28 = vpop.f32.mrf.mxu0 }
 0x52d   : > { %v3946_v62 = vadd.f32 %v3945_v51, %v3919_v31 }
 0x52e   : > { %v4042_v56 = vadd.f32 %v3894_v12, %v7142_v46  ;;  %5507 = vmatmul.f32.vlgmr.msra.gmra.mxu1 %v7129_v48 }
 0x52f   : > { %5590 = vmatmul.f32.vlgmr.msrb.gmra.mxu0 %v5589_v40  ;;  %5708 = vmatpush.msra.mxu1 %v7147_v23  ;;  %v3970_v36 = vadd.f32 %v3969_v28, %v3946_v62 }
 0x530   : > { %5664 = vmatmul.f32.vlgmr.msrb.gmra.mxu3 %v7172_v41  ;;  %5783 = vmatpush.msrb.mxu0 %v5756_v15 }
 0x531   : > { %5854 = vmatpush.msrb.mxu3 %v7149_v32  ;;  %5640 = vmatmul.f32.vlgmr.msrb.gmra.mxu2 %v7165_v4 }
 0x532   : > { %5832 = vmatpush.msrb.mxu2 %v5757_v0 }
 0x533   : > { %v4039_v52 = vpop.f32.mrf.mxu3  ;;  %v3993_v35 = vpop.f32.mrf.mxu1 }
 0x534   : > { %v3994_v21 = vadd.f32 %v3993_v35, %v3970_v36  ;;  %v4017_v5 = vpop.f32.mrf.mxu2  ;;  %v4076_v60 = vpop.f32.mrf.mxu0 }
 0x536   : > { %v4018_v26 = vadd.f32 %v4017_v5, %v3994_v21  ;;  %5616 = vmatmul.f32.vlgmr.msrb.gmra.mxu1 %v7160_v59 }
 0x537   : > { %5688 = vmatmul.f32.vlgmr.msra.gmra.mxu0 %v7160_v59  ;;  %5806 = vmatpush.msrb.mxu1 %v7149_v32 }
 0x538   : > { %5762 = vmatmul.f32.vlgmr.msra.gmra.mxu3 %v7160_v59  ;;  %v4040_v48 = vadd.f32 %v4039_v52, %v4018_v26 }
 0x539   : > { %5736 = vmatmul.f32.vlgmr.msra.gmra.mxu2 %v5589_v40 }
 0x53a   : > { %v4043_v19 = vadd.f32 %v4040_v48, %v3739_v6 }
 0x53b   : > { %v4150_v63 = vpop.f32.mrf.mxu3  ;;  %v4102_v57 = vpop.f32.mrf.mxu1 }
 0x53c   : > { %v4103_v1 = vadd.f32 %v4102_v57, %v4076_v60  ;;  %v4126_v37 = vpop.f32.mrf.mxu2  ;;  %v4174_v39 = vpop.f32.mrf.mxu0 }
 0x53e   : > { %v4127_v33 = vadd.f32 %v4126_v37, %v4103_v1  ;;  %5710 = vmatmul.f32.vlgmr.msra.gmra.mxu1 %v7160_v59 }
 0x53f   : > { %5786 = vmatmul.f32.vlgmr.msrb.gmra.mxu0 %v7165_v4 }
 0x540   : > { %5856 = vmatmul.f32.vlgmr.msrb.gmra.mxu3 %v7160_v59  ;;  %v4151_v45 = vadd.f32 %v4150_v63, %v4127_v33 }
 0x541   : > { %5834 = vmatmul.f32.vlgmr.msrb.gmra.mxu2 %v7160_v59 }
 0x542   : > { %v4175_v18 = vadd.f32 %v4174_v39, %v4151_v45 }
 0x543   : > { %v4248_v38 = vpop.f32.mrf.mxu3  ;;  %v4196_v43 = vpop.f32.mrf.mxu1 }
 0x544   : > { %v4197_v46 = vadd.f32 %v4196_v43, %v4175_v18  ;;  %v4222_v11 = vpop.f32.mrf.mxu2  ;;  %v4272_v2 = vpop.f32.mrf.mxu0 }
 0x545   : > { %v4249_v13 = vadd.f32 %v4248_v38, %v4222_v11 }
 0x546   : > { %v4345_v23 = vadd.f32 %v4197_v46, %v4042_v56  ;;  %5810 = vmatmul.f32.vlgmr.msrb.gmra.mxu1 %v7172_v41 }
 0x547   : > { %v4273_v32 = vadd.f32 %v4272_v2, %v4249_v13 }
 0x54b   : > { %v4342_v14 = vpop.f32.mrf.mxu3  ;;  %v4296_v22 = vpop.f32.mrf.mxu1 }
 0x54c   : > { %v4297_v55 = vadd.f32 %v4296_v22, %v4273_v32  ;;  %v4320_v47 = vpop.f32.mrf.mxu2  ;;  %v4379_v15 = vpop.f32.mrf.mxu0 }
 0x54e   : > { %v4321_v53 = vadd.f32 %v4320_v47, %v4297_v55 }
 0x550   : > { %v4343_v49 = vadd.f32 %v4342_v14, %v4321_v53 }
 0x552   : > { %v4346_v24 = vadd.f32 %v4343_v49, %v4043_v19 }
 0x553   : > { %v4453_v59 = vpop.f32.mrf.mxu3  ;;  %v4405_v44 = vpop.f32.mrf.mxu1 }
 0x554   : > { %v4406_v58 = vadd.f32 %v4405_v44, %v4379_v15  ;;  %v4429_v29 = vpop.f32.mrf.mxu2  ;;  %v4477_v27 = vpop.f32.mrf.mxu0 }
 0x556   : > { %v4430_v0 = vadd.f32 %v4429_v29, %v4406_v58 }
 0x558   : > { %v4454_v4 = vadd.f32 %v4453_v59, %v4430_v0 }
 0x55a   : > { %v4478_v6 = vadd.f32 %v4477_v27, %v4454_v4 }
 0x55b   : > { %v4551_v9 = vpop.f32.mrf.mxu3  ;;  %v4499_v3 = vpop.f32.mrf.mxu1 }
 0x55c   : > { %v4500_v50 = vadd.f32 %v4499_v3, %v4478_v6  ;;  %v4525_v41 = vpop.f32.mrf.mxu2  ;;  %v4575_v61 = vpop.f32.mrf.mxu0 }
 0x55d   : > { %v4552_v25 = vadd.f32 %v4551_v9, %v4525_v41 }
 0x55e   : > { %v4648_v34 = vadd.f32 %v4500_v50, %v4345_v23 }
 0x55f   : > { %v4576_v16 = vadd.f32 %v4575_v61, %v4552_v25 }
 0x563   : > { %v4645_v8 = vpop.f32.mrf.mxu3  ;;  %v4599_v42 = vpop.f32.mrf.mxu1 }
 0x564   : > { %v4600_v54 = vadd.f32 %v4599_v42, %v4576_v16  ;;  %v4623_v17 = vpop.f32.mrf.mxu2  ;;  %v4682_v10 = vpop.f32.mrf.mxu0 }
 0x566   : > { %v4624_v20 = vadd.f32 %v4623_v17, %v4600_v54 }
 0x568   : > { %v4646_v40 = vadd.f32 %v4645_v8, %v4624_v20 }
 0x56a   : > { %v4649_v51 = vadd.f32 %v4646_v40, %v4346_v24 }
 0x56b   : > { %v4756_v7 = vpop.f32.mrf.mxu3  ;;  %v4708_v12 = vpop.f32.mrf.mxu1 }
 0x56c   : > { %v4709_v31 = vadd.f32 %v4708_v12, %v4682_v10  ;;  %v4732_v28 = vpop.f32.mrf.mxu2  ;;  %v4780_v62 = vpop.f32.mrf.mxu0 }
 0x56e   : > { %v4733_v56 = vadd.f32 %v4732_v28, %v4709_v31 }
 0x570   : > { %v4757_v36 = vadd.f32 %v4756_v7, %v4733_v56 }
 0x572   : > { %v4781_v52 = vadd.f32 %v4780_v62, %v4757_v36 }
 0x573   : > { %v4854_v35 = vpop.f32.mrf.mxu3  ;;  %v4802_v21 = vpop.f32.mrf.mxu1 }
 0x574   : > { %v4803_v5 = vadd.f32 %v4802_v21, %v4781_v52  ;;  %v4828_v60 = vpop.f32.mrf.mxu2  ;;  %v4878_v26 = vpop.f32.mrf.mxu0 }
 0x575   : > { %v4855_v48 = vadd.f32 %v4854_v35, %v4828_v60 }
 0x576   : > { %v7196_v19 = vadd.f32 %v4803_v5, %v4648_v34 }
 0x577   : > { %v4879_v63 = vadd.f32 %v4878_v26, %v4855_v48 }
 0x57b   : > { %v4948_v57 = vpop.f32.mrf.mxu3  ;;  %v4902_v1 = vpop.f32.mrf.mxu1 }
 0x57c   : > { %v4903_v37 = vadd.f32 %v4902_v1, %v4879_v63  ;;  %v4926_v39 = vpop.f32.mrf.mxu2  ;;  %v4985_v33 = vpop.f32.mrf.mxu0 }
 0x57e   : > { %v4927_v45 = vadd.f32 %v4926_v39, %v4903_v37 }
 0x580   : > { %v4949_v18 = vadd.f32 %v4948_v57, %v4927_v45 }
 0x582   : > { %v7198_v38 = vadd.f32 %v4949_v18, %v4649_v51 }
 0x583   : > { %v5059_v43 = vpop.f32.mrf.mxu3  ;;  %v5011_v46 = vpop.f32.mrf.mxu1 }
 0x584   : > { %v5035_v11 = vpop.f32.mrf.mxu2  ;;  %v5083_v2 = vpop.f32.mrf.mxu0  ;;  %v5012_v3 = vadd.f32 %v5011_v46, %v4985_v33 }
 0x586   : > { %v5036_v25 = vadd.f32 %v5035_v11, %v5012_v3 }
 0x588   : > { %v5060_v10 = vadd.f32 %v5059_v43, %v5036_v25 }
 0x58a   : > { %v5084_v62 = vadd.f32 %v5083_v2, %v5060_v10 }
 0x58b   : > { %v5157_v13 = vpop.f32.mrf.mxu3  ;;  %v5105_v23 = vpop.f32.mrf.mxu1 }
 0x58c   : > { %v5131_v32 = vpop.f32.mrf.mxu2  ;;  %v5181_v14 = vpop.f32.mrf.mxu0  ;;  %v5106_v26 = vadd.f32 %v5105_v23, %v5084_v62 }
 0x58d   : > { %v5158_v34 = vadd.f32 %v5157_v13, %v5131_v32 }
 0x58e   : > { %v5254_v33 = vadd.f32 %v5106_v26, %v7196_v19 }
 0x58f   : > { %v5182_v20 = vadd.f32 %v5181_v14, %v5158_v34 }
 0x593   : > { %v5251_v22 = vpop.f32.mrf.mxu3  ;;  %v5205_v55 = vpop.f32.mrf.mxu1 }
 0x594   : > { %v5229_v47 = vpop.f32.mrf.mxu2  ;;  %v5288_v15 = vpop.f32.mrf.mxu0  ;;  %v5206_v51 = vadd.f32 %v5205_v55, %v5182_v20 }
 0x596   : > { %v5230_v35 = vadd.f32 %v5229_v47, %v5206_v51 }
 0x598   : > { %v5252_v57 = vadd.f32 %v5251_v22, %v5230_v35 }
 0x59a   : > { %v5255_v2 = vadd.f32 %v5252_v57, %v7198_v38 }
 0x59b   : > { %v5362_v53 = vpop.f32.mrf.mxu3  ;;  %v5314_v49 = vpop.f32.mrf.mxu1 }
 0x59c   : > { %v5338_v24 = vpop.f32.mrf.mxu2  ;;  %v5386_v59 = vpop.f32.mrf.mxu0  ;;  %v5315_v50 = vadd.f32 %v5314_v49, %v5288_v15 }
 0x59e   : > { %v5339_v54 = vadd.f32 %v5338_v24, %v5315_v50 }
 0x5a0   : > { %v5363_v7 = vadd.f32 %v5362_v53, %v5339_v54  ;;  %v7340_v54 = vld [vmem:[#allocation5_spill] sm:$0xff] }
 0x5a2   : > { %v5387_v21 = vadd.f32 %v5386_v59, %v5363_v7 }
 0x5a3   : > { %v5460_v44 = vpop.f32.mrf.mxu3  ;;  %v5408_v58 = vpop.f32.mrf.mxu1 }
 0x5a4   : > { %v5434_v29 = vpop.f32.mrf.mxu2  ;;  %v5484_v27 = vpop.f32.mrf.mxu0  ;;  %v5409_v1 = vadd.f32 %v5408_v58, %v5387_v21 }
 0x5a5   : > { %v5461_v17 = vadd.f32 %v5460_v44, %v5434_v29 }
 0x5a6   : > { %v5557_v13 = vadd.f32 %v5409_v1, %v5254_v33 }
 0x5a7   : > { %v5485_v12 = vadd.f32 %v5484_v27, %v5461_v17 }
 0x5ab   : > { %v5554_v0 = vpop.f32.mrf.mxu3  ;;  %v5508_v4 = vpop.f32.mrf.mxu1 }
 0x5ac   : > { %v5532_v6 = vpop.f32.mrf.mxu2  ;;  %v5591_v9 = vpop.f32.mrf.mxu0  ;;  %v5509_v56 = vadd.f32 %v5508_v4, %v5485_v12 }
 0x5ae   : > { %v5533_v48 = vadd.f32 %v5532_v6, %v5509_v56 }
 0x5b0   : > { %v5555_v45 = vadd.f32 %v5554_v0, %v5533_v48 }
 0x5b2   : > { %v5558_v14 = vadd.f32 %v5555_v45, %v5255_v2 }
 0x5b3   : > { %v5665_v41 = vpop.f32.mrf.mxu3  ;;  %v5617_v61 = vpop.f32.mrf.mxu1 }
 0x5b4   : > { %v5618_v16 = vadd.f32 %v5617_v61, %v5591_v9  ;;  %v5641_v8 = vpop.f32.mrf.mxu2  ;;  %v5689_v42 = vpop.f32.mrf.mxu0 }
 0x5b6   : > { %v5642_v40 = vadd.f32 %v5641_v8, %v5618_v16 }
 0x5b8   : > { %v5666_v36 = vadd.f32 %v5665_v41, %v5642_v40 }
 0x5ba   : > { %v5690_v63 = vadd.f32 %v5689_v42, %v5666_v36 }
 0x5bb   : > { %v5711_v31 = vpop.f32.mrf.mxu1  ;;  %v5763_v28 = vpop.f32.mrf.mxu3 }
 0x5bc   : > { %v5737_v52 = vpop.f32.mrf.mxu2  ;;  %v5787_v60 = vpop.f32.mrf.mxu0  ;;  %v5712_v18 = vadd.f32 %v5711_v31, %v5690_v63 }
 0x5bd   : > { %v5764_v5 = vadd.f32 %v5763_v28, %v5737_v52 }
 0x5be   : > { %v5860_v55 = vadd.f32 %v5712_v18, %v5557_v13 }
 0x5bf   : > { %v5788_v37 = vadd.f32 %v5787_v60, %v5764_v5 }
 0x5c0   : > { %v5862_v22 = vsel %vm315_vm3, %v5860_v55, 0.0 }
 0x5c3   : > { %v5811_v39 = vpop.f32.mrf.mxu1  ;;  %v5857_v11 = vpop.f32.mrf.mxu3 }
 0x5c4   : > { %v5812_v43 = vadd.f32 %v5811_v39, %v5788_v37  ;;  %v5835_v46 = vpop.f32.mrf.mxu2 }
 0x5c6   : > { %v5836_v32 = vadd.f32 %v5835_v46, %v5812_v43 }
 0x5c8   : > { %v5858_v23 = vadd.f32 %v5857_v11, %v5836_v32 }
 0x5ca   : > { %v5861_v47 = vadd.f32 %v5858_v23, %v5558_v14 }
 0x5cc   : > { %v5863_v15 = vsel %vm315_vm3, %v5861_v47, 0.0 }
 0x5cd   : > { %v5864_v53 = vadd.f32 %v5863_v15, %v5862_v22 }
 0x5cf   : > { %5865 = vadd.xlane.f32.xlu2 %v5864_v53 }
 0x642   : > { %v5866_v19 = vpop.xlane.xlu2 %5865 }
 0x643   : > { %v5867_v49 = vmul.f32 %v5866_v19, %v6822_v30 }
 0x645   : > { %v5868_v24 = vsub.f32 %v5860_v55, %v5867_v49  ;;  %v5869_v59 = vsub.f32 %v5861_v47, %v5867_v49 }
 0x647   : > { %v5870_v44 = vmul.f32 %v5868_v24, %v5868_v24  ;;  %v5871_v38 = vmul.f32 %v5869_v59, %v5869_v59 }
 0x649   : > { %v5872_v58 = vsel %vm315_vm3, %v5870_v44, 0.0  ;;  %v5873_v29 = vsel %vm315_vm3, %v5871_v38, 0.0 }
 0x64a   : > { %v5874_v27 = vadd.f32 %v5873_v29, %v5872_v58 }
 0x64c   : > { %5875 = vadd.xlane.f32.xlu1 %v5874_v27 }
 0x6bf   : > { %v5876_v0 = vpop.xlane.xlu1 %5875 }
 0x6c0   : > { %v5877_v4 = vmul.f32 %v5876_v0, %v6822_v30 }
 0x6c2   : > { %v5878_v6 = vadd.f32 1e-05, %v5877_v4 }
 0x6c4   : > { %6036 = vrsqrt.f32 %v5878_v6  ;;  %vm5885_vm0 = vweird.f32 %v5878_v6 }
 0x6ca   : > { %v6037_v9 = vpop.eup %6036 }
 0x6cb   : > { %v5880_v3 = vmul.f32 %v6037_v9, %v5878_v6  ;;  %vm5886_vm15 = vweird.f32 %v6037_v9 }
 0x6cc   : > { %vm5887_vm1 = vmor %vm5885_vm0, %vm5886_vm15 }
 0x6cd   : > { %v5881_v50 = vmul.f32 %v6037_v9, %v5880_v3 }
 0x6cf   : > { %v5882_v41 = vmul.f32 0.5, %v5881_v50 }
 0x6d1   : > { %v5883_v61 = vsub.f32 1.5, %v5882_v41 }
 0x6d3   : > { %v5884_v25 = vmul.f32 %v6037_v9, %v5883_v61 }
 0x6d5   : > { %v5888_v34 = vsel %vm5887_vm1, %v6037_v9, %v5884_v25 }
 0x6d6   : > { %v5890_v30 = vmul.f32 %v5888_v34, %v5869_v59  ;;  %v5889_v16 = vmul.f32 %v5888_v34, %v5868_v24 }
 0x6d8   : > { %v5893_v8 = vrot.slane %v5890_v30, 4 }
 0x6da   : > { %v5894_v42 = vsel %vm315_vm3, %v5889_v16, %v5893_v8 }
 0x6db   : > { %v5896_v17 = vadd.f32 %v5894_v42, %v7340_v54 }
 0x6dd   : > { %5897 = vst [vmem:[%s163_s17] sm:$0xff] %v5896_v17 }
 0x6de   : > { %6065 = shalt.err (!%p6062_p3)
}
 0x6df   : > { %5988 = dma.vmem_to_hbm [thread:$0]  (%p6165_p5), %s5913_s19, 128, %s5915_s20, %s5899_s16  }
 0x6e0 PF: > { %p5994_p4 = scmp.ge.s32.totalorder %s6100_s15, 2  ;;  %s5926_s8 = sand.u32 1, %s6088_s12  }
 0x6e1   : > { %s5927_s9 = scalar_lea.sflag [#allocation3], %s5926_s8 }
 0x6e2   : > { %p5991_p7 = pnand %p5994_p4, %p6169_p6 }
 0x6e4   : > { %p5992_p8 = pneg %p5991_p7 }
 0x6e6   : > { %6083 = dma.done.wait (%p5992_p8), %s5927_s9, 128  }
 0x6e7   : > { %6085 = vsyncadd (%p5992_p8), %s5927_s9, 4294967168  ;;  %p13_p9 = scmp.ge.s32.totalorder %s6152_s18, 4   ;;  %s7341_s12 = smov %s6092_s13 }
 0x6e8   : > { %s7342_s13 = smov %s6096_s14  ;;  %s7343_s14 = smov %s6163_s21 }
 0x6e9   : > { %s7344_s15 = smov %s6152_s18  ;;  %15 = sbr.rel (!%p13_p9) target bundleno = 3 (0x3), region = 67 }
 0x6ee   :  { %5933 = vsyncpa [#allocation3], 1 }
 0x6ef   :  { %5935 = vsyncpa [#allocation3 + $0x1], 1 }

</bundles_post_ra>
